<compile_context>
chip_gen: v5e
topology: v5e:2x2
jax: 0.10.0
libtpu: 0.0.40
codegen_flags: <defaults>
</compile_context>

<pallas_src>
import functools

import numpy as np
import jax
import jax.numpy as jnp
from jax import lax
from jax.experimental import pallas as pl
from jax.experimental.pallas import tpu as pltpu


def _round_up(x, m):
    return ((x + m - 1) // m) * m


def _pick_tiles():
    """256-wide tiles fill the 2x256^2 MXU on v6e/v7x; 128 fills v5e's 4x128^2."""
    try:
        kind = jax.devices()[0].device_kind.lower()
    except Exception:
        kind = ""
    if ("v6" in kind) or ("v7" in kind) or ("7x" in kind):
        return 256, 256
    return 128, 128


def genconv_kernel(
    blk_off_ref,        # SMEM [n_blocks]   first edge-block index per node block
    blk_cnt_ref,        # SMEM [n_blocks]   number of edge blocks per node block
    src_ref,            # SMEM [E_pad]      dst-sorted source node ids
    h_hbm,              # ANY  [N_pad, DP]  node features in HBM (DMA-gather target)
    hblk_ref,           # VMEM [TN, DP]     node block (residual input)
    he_ref,             # VMEM [TE, DP]     dst-sorted edge features, one block
    dst_ref,            # VMEM [1, TE]      dst-sorted destination ids, one block
    w_ref,              # VMEM [DP, OP]     Linear weight (transposed, zero padded)
    b_ref,              # VMEM [1, OP]      Linear bias (zero padded)
    zshift_ref,         # VMEM [1, DP]      per-lane upper bound on beta*m
    o_ref,              # VMEM [TN, OP]     output block
    num_ref,            # VMEM [TN, DP]     scratch: softmax numerator accumulator
    den_ref,            # VMEM [TN, DP]     scratch: softmax denominator accumulator
    gbuf,               # VMEM [TE, DP]     scratch: gathered h[src] rows
    gsem,               # DMA semaphore for the gather
    *, beta, eps, tn, te, dp):
    i = pl.program_id(0)          # node block   ("parallel")
    k = pl.program_id(1)          # edge block   (reduction, "arbitrary")
    nk = pl.num_programs(1)

    @pl.when(k == 0)
    def _init():
        num_ref[...] = jnp.zeros_like(num_ref)
        den_ref[...] = jnp.zeros_like(den_ref)

    # Only edge blocks that actually hold edges destined for this node block are
    # processed; steps past this node block's count are skipped entirely.
    @pl.when(k < blk_cnt_ref[i])
    def _accumulate():
        eb = blk_off_ref[i] + k                  # global edge-block index
        base = eb * te                           # first edge of this block

        # ---- DMA gather: h[src[e]] -> gbuf[e]  (row copies straight from HBM) --
        # TODO(synk): double-buffer gbuf and overlap these gathers with the
        # previous block's compute if the gather shows up on the critical path.
        @pl.loop(0, te)
        def _issue(e2):
            nid = src_ref[base + e2]
            pltpu.make_async_copy(h_hbm.at[nid], gbuf.at[e2], gsem).start()

        @pl.loop(0, te)
        def _drain(e2):
            pltpu.make_async_copy(h_hbm.at[0], gbuf.at[0], gsem).wait()

        # ---- message: m = relu(h_src + he) + eps --------------------------------
        m = jnp.maximum(gbuf[...] + he_ref[...], 0.0) + eps            # [TE, DP]
        bm = m if beta == 1.0 else beta * m
        # exp with a precomputed per-lane shift (same constant for every edge of a
        # given destination -> softmax unchanged, exp() cannot overflow).
        z = jnp.exp(bm - zshift_ref[...])                              # [TE, DP]

        # ---- scatter into this node block: [TN, TE] one-hot on the MXU ---------
        rows = lax.broadcasted_iota(jnp.int32, (tn, te), 0) + i * tn   # [TN, TE]
        onehot = (rows == dst_ref[...]).astype(jnp.float32)            # [TN, TE]
        num_ref[...] += jnp.dot(onehot, m * z, preferred_element_type=jnp.float32)
        den_ref[...] += jnp.dot(onehot, z, preferred_element_type=jnp.float32)

    # ---- finalize: softmax divide, residual add, Linear(+bias) -----------------
    @pl.when(k == nk - 1)
    def _finalize():
        # Isolated / padded nodes: num == den == 0 -> agg == 0 (DGL sum semantics).
        agg = num_ref[...] * pl.reciprocal(den_ref[...] + 1e-20, approx=True)
        feats = hblk_ref[...] + agg
        o_ref[...] = (jnp.dot(feats, w_ref[...], preferred_element_type=jnp.float32)
                      + b_ref[...]).astype(o_ref.dtype)


def genconv_forward(h, he, src, dst, w_t, b, *, beta, eps,
                    node_block=None, edge_block=None):
    """Host-side graph prep + tiled Pallas kernel.  Returns [N, out_dim]."""
    n, d = h.shape
    e = int(he.shape[0])
    o = w_t.shape[1]

    tn_def, te_def = _pick_tiles()
    tn = int(node_block) if node_block else tn_def
    te = int(edge_block) if edge_block else te_def

    dp = _round_up(d, 128)            # lane-dense feature dim
    op = _round_up(o, 128)            # lane-dense output dim
    n_pad = _round_up(n, tn)
    e_pad = _round_up(e, te)
    n_blocks = n_pad // tn

    # ---- host-side graph prep: sort edges by destination so each node block's
    # incident edges occupy a contiguous run of edge blocks (numpy, outside jit).
    src_np = np.asarray(src, dtype=np.int32)
    dst_np = np.asarray(dst, dtype=np.int32)
    order_np = np.argsort(dst_np, kind="stable")
    src_sorted = src_np[order_np]
    dst_sorted = dst_np[order_np]

    src_pk = np.zeros((e_pad,), np.int32)
    src_pk[:e] = src_sorted
    dst_pk = np.full((1, e_pad), n_pad, np.int32)   # sentinel dst: matches no row
    dst_pk[0, :e] = dst_sorted

    blk_lo = np.searchsorted(dst_sorted, np.arange(n_blocks) * tn, side="left")
    blk_hi = np.searchsorted(dst_sorted, (np.arange(n_blocks) + 1) * tn, side="left")
    has_edges = blk_hi > blk_lo
    blk_off = np.where(has_edges, blk_lo // te, 0).astype(np.int32)
    blk_last = np.where(has_edges, np.maximum(blk_hi - 1, 0) // te, 0)
    blk_cnt = np.where(has_edges, blk_last - blk_off + 1, 0).astype(np.int32)
    max_eblk = max(int(blk_cnt.max()) if blk_cnt.size else 1, 1)

    # ---- padded / lane-dense operands ------------------------------------------
    h_p = jnp.zeros((n_pad, dp), jnp.float32).at[:n, :d].set(h)
    he_sorted = jnp.asarray(he, jnp.float32)[order_np]
    he_p = jnp.zeros((e_pad, dp), jnp.float32).at[:e, :d].set(he_sorted)
    w_p = jnp.zeros((dp, op), jnp.float32).at[:d, :o].set(w_t)
    b_p = jnp.zeros((1, op), jnp.float32).at[:, :o].set(jnp.reshape(b, (1, o)))

    # Per-lane upper bound on beta*m with m = relu(h_src + he) + eps.  Subtracting
    # the same per-lane constant from every edge's logit leaves the softmax
    # unchanged but keeps exp() from overflowing (replaces the running max).
    he_max = jnp.maximum(jnp.max(he_sorted, axis=0), 0.0)
    m_bound = jnp.maximum(jnp.max(h, axis=0) + he_max, 0.0) + eps
    zshift = jnp.zeros((1, dp), jnp.float32).at[0, :d].set(float(beta) * m_bound)

    blk_off_j = jnp.asarray(blk_off)
    blk_cnt_j = jnp.asarray(blk_cnt)
    src_pk_j = jnp.asarray(src_pk)
    dst_pk_j = jnp.asarray(dst_pk)

    def edge_block_idx(i, k, off, cnt):
        # Clamp so out-of-range steps re-fetch the last valid block (the kernel
        # skips them via pl.when, so nothing is double-counted).
        return off[i] + jnp.minimum(k, jnp.maximum(cnt[i] - 1, 0))

    grid = (n_blocks, max_eblk)
    kernel = functools.partial(genconv_kernel, beta=float(beta), eps=float(eps),
                               tn=tn, te=te, dp=dp)

    out = pl.pallas_call(
        kernel,
        out_shape=jax.ShapeDtypeStruct((n_pad, op), jnp.float32),
        grid_spec=pltpu.PrefetchScalarGridSpec(
            num_scalar_prefetch=3,
            grid=grid,
            in_specs=[
                pl.BlockSpec(memory_space=pl.ANY),                        # h in HBM (gather)
                pl.BlockSpec((tn, dp), lambda i, k, *_: (i, 0)),          # h residual block
                pl.BlockSpec((te, dp),
                             lambda i, k, off, cnt, s: (edge_block_idx(i, k, off, cnt), 0)),
                pl.BlockSpec((1, te),
                             lambda i, k, off, cnt, s: (0, edge_block_idx(i, k, off, cnt))),
                pl.BlockSpec((dp, op), lambda i, k, *_: (0, 0),
                             pipeline_mode=pl.Buffered(1)),               # Linear weight
                pl.BlockSpec((1, op), lambda i, k, *_: (0, 0),
                             pipeline_mode=pl.Buffered(1)),               # Linear bias
                pl.BlockSpec((1, dp), lambda i, k, *_: (0, 0),
                             pipeline_mode=pl.Buffered(1)),               # exp shift
            ],
            out_specs=pl.BlockSpec((tn, op), lambda i, k, *_: (i, 0)),
            scratch_shapes=[
                pltpu.VMEM((tn, dp), jnp.float32),      # softmax numerator
                pltpu.VMEM((tn, dp), jnp.float32),      # softmax denominator
                pltpu.VMEM((te, dp), jnp.float32),      # gathered h[src] rows
                pltpu.SemaphoreType.DMA(()),            # gather semaphore
            ]),
        compiler_params=pltpu.CompilerParams(
            dimension_semantics=("parallel", "arbitrary"),
            vmem_limit_bytes=32 * 1024 * 1024),
    )(blk_off_j, blk_cnt_j, src_pk_j,
      h_p, h_p, he_p, dst_pk_j, w_p, b_p, zshift)

    return out[:n, :o]


def reference_forward(h, he, src, dst, w_t, b, *, beta, eps):
    """Pure-JAX reference (segment ops) mirroring the DGL semantics."""
    n = h.shape[0]
    m = jnp.maximum(h[src] + he, 0.0) + eps
    z = jnp.exp(beta * m)
    den = jax.ops.segment_sum(z, dst, num_segments=n)
    a = z / den[dst]
    agg = jax.ops.segment_sum(m * a, dst, num_segments=n)
    feats = h + agg
    return feats @ w_t + b


if __name__ == "__main__":
    # ---- net params ----
    in_dim, out_dim = 32, 32
    beta, eps = 1.0, 1e-7
    # 300 nodes / 1200 edges with 128-wide tiles -> 3 node blocks, data-dependent
    # edge-block ranges per node block (exercises the sorted/prefetched path).
    n_nodes, n_edges = 300, 1200

    key = jax.random.PRNGKey(0)
    k_h, k_src, k_dst, k_ef, k_emb, k_w, k_b = jax.random.split(key, 7)

    # node features
    h = jax.random.normal(k_h, (n_nodes, in_dim), dtype=jnp.float32)

    # graph connectivity
    src = jax.random.randint(k_src, (n_edges,), 0, n_nodes, dtype=jnp.int32)
    dst = jax.random.randint(k_dst, (n_edges,), 0, n_nodes, dtype=jnp.int32)

    # TODO(synk): BondEncoder (from OGB) is an embedding-sum over categorical bond
    # features; reproduced with deterministic synthetic tables, looked up in plain
    # JAX glue (not part of the Pallas kernel).
    bond_vocab = (8, 8, 4)
    edge_feats = jnp.stack(
        [jax.random.randint(jax.random.fold_in(k_ef, i), (n_edges,), 0, v, dtype=jnp.int32)
         for i, v in enumerate(bond_vocab)], axis=1)                       # [E, 3]
    emb_tables = [0.1 * jax.random.normal(jax.random.fold_in(k_emb, i), (v, in_dim),
                                          dtype=jnp.float32)
                  for i, v in enumerate(bond_vocab)]
    he = sum(emb_tables[i][edge_feats[:, i]] for i in range(len(bond_vocab)))  # [E, in_dim]

    # MLP with mlp_layers=1: single nn.Linear(in_dim, out_dim) (PyTorch W is [O, D])
    bound = 1.0 / (in_dim ** 0.5)
    w = jax.random.uniform(k_w, (out_dim, in_dim), jnp.float32, -bound, bound)
    b = jax.random.uniform(k_b, (1, out_dim), jnp.float32, -bound, bound)
    w_t = jnp.transpose(w)                                                 # [D, O]

    out = genconv_forward(h, he, src, dst, w_t, b, beta=beta, eps=eps,
                          node_block=128, edge_block=128)
    out = jax.block_until_ready(out)

    ref = reference_forward(h, he, src, dst, w_t, b, beta=beta, eps=eps)
    assert out.shape == (n_nodes, out_dim)
    # 5e-3 tolerance accounts for the approximate EUP reciprocal in the kernel.
    assert jnp.allclose(out, ref, rtol=5e-3, atol=5e-3), "mismatch vs pure-JAX reference"

    print("KERNEL_OK")
</pallas_src>

<mosaic_0001>
module attributes {stable_mosaic.version = 11 : i64} {
  func.func @genconv_kernel(%arg0: i32, %arg1: i32, %arg2: memref<3xi32, #tpu.memory_space<smem>>, %arg3: memref<3xi32, #tpu.memory_space<smem>>, %arg4: memref<1280xi32, #tpu.memory_space<smem>>, %arg5: memref<384x128xf32, #tpu.memory_space<any>>, %arg6: memref<128x128xf32, #tpu.memory_space<vmem>>, %arg7: memref<128x128xf32, #tpu.memory_space<vmem>>, %arg8: memref<1x128xi32, #tpu.memory_space<vmem>>, %arg9: memref<128x128xf32, #tpu.memory_space<vmem>>, %arg10: memref<1x128xf32, #tpu.memory_space<vmem>>, %arg11: memref<1x128xf32, #tpu.memory_space<vmem>>, %arg12: memref<128x128xf32, #tpu.memory_space<vmem>>, %arg13: memref<128x128xf32, #tpu.memory_space<vmem>>, %arg14: memref<128x128xf32, #tpu.memory_space<vmem>>, %arg15: memref<128x128xf32, #tpu.memory_space<vmem>>, %arg16: memref<!tpu.dma_semaphore, #tpu.memory_space<semaphore_mem>>) attributes {dimension_semantics = [#tpu.dimension_semantics<parallel>, #tpu.dimension_semantics<arbitrary>], iteration_bounds = array<i64: 3, 6>, scalar_prefetch = 3 : i64, scratch_operands = 4 : i64, tpu.core_type = #tpu.core_type<tc>, window_params = [{}, {transform_indices = @transform_1, window_bounds = array<i64: 128, 128>}, {transform_indices = @transform_2, window_bounds = array<i64: 128, 128>}, {transform_indices = @transform_3, window_bounds = array<i64: 1, 128>}, {pipeline_mode = #tpu.pipeline_mode<synchronous>, transform_indices = @transform_4, window_bounds = array<i64: 128, 128>}, {pipeline_mode = #tpu.pipeline_mode<synchronous>, transform_indices = @transform_5, window_bounds = array<i64: 1, 128>}, {pipeline_mode = #tpu.pipeline_mode<synchronous>, transform_indices = @transform_6, window_bounds = array<i64: 1, 128>}, {transform_indices = @transform_7, window_bounds = array<i64: 128, 128>}]} {
    %c0_i32 = arith.constant 0 : i32
    %0 = arith.cmpi eq, %arg1, %c0_i32 : i32
    %1 = arith.extui %0 : i1 to i32
    %c0_i32_0 = arith.constant 0 : i32
    %2 = arith.cmpi ne, %1, %c0_i32_0 : i32
    scf.if %2 {
      %cst = arith.constant 0.000000e+00 : f32
      %11 = vector.broadcast %cst : f32 to vector<128x128xf32>
      %c0 = arith.constant 0 : index
      %c0_3 = arith.constant 0 : index
      %12 = vector.load %arg13[%c0, %c0_3] : memref<128x128xf32, #tpu.memory_space<vmem>>, vector<128x128xf32>
      tpu.vector_store %arg13[%c0, %c0_3], %11 {strides = array<i32>} : memref<128x128xf32, #tpu.memory_space<vmem>>, vector<128x128xf32>,
      %cst_4 = arith.constant 0.000000e+00 : f32
      %13 = vector.broadcast %cst_4 : f32 to vector<128x128xf32>
      %c0_5 = arith.constant 0 : index
      %c0_6 = arith.constant 0 : index
      %14 = vector.load %arg14[%c0_5, %c0_6] : memref<128x128xf32, #tpu.memory_space<vmem>>, vector<128x128xf32>
      tpu.vector_store %arg14[%c0_5, %c0_6], %13 {strides = array<i32>} : memref<128x128xf32, #tpu.memory_space<vmem>>, vector<128x128xf32>,
    } else {
    }
    %3 = arith.index_cast %arg0 : i32 to index
    %4 = memref.load %arg3[%3] : memref<3xi32, #tpu.memory_space<smem>>
    %5 = arith.cmpi slt, %arg1, %4 : i32
    %6 = arith.extui %5 : i1 to i32
    %c0_i32_1 = arith.constant 0 : i32
    %7 = arith.cmpi ne, %6, %c0_i32_1 : i32
    scf.if %7 {
      %11 = arith.index_cast %arg0 : i32 to index
      %12 = memref.load %arg2[%11] : memref<3xi32, #tpu.memory_space<smem>>
      %13 = arith.addi %12, %arg1 : i32
      %c128_i32 = arith.constant 128 : i32
      %14 = arith.muli %13, %c128_i32 : i32
      %c0_i32_3 = arith.constant 0 : i32
      %c128_i32_4 = arith.constant 128 : i32
      %15 = arith.addi %c0_i32_3, %c128_i32_4 : i32
      %c1_i32 = arith.constant 1 : i32
      scf.for %arg17 = %c0_i32_3 to %15 step %c1_i32  : i32 {
        %c1_i32_28 = arith.constant 1 : i32
        %46 = arith.muli %arg17, %c1_i32_28 : i32
        %c0_i32_29 = arith.constant 0 : i32
        %47 = arith.addi %c0_i32_29, %46 : i32
        %48 = arith.addi %14, %47 : i32
        %49 = arith.index_cast %48 : i32 to index
        %50 = memref.load %arg4[%49] : memref<1280xi32, #tpu.memory_space<smem>>
        %c0_i32_30 = arith.constant 0 : i32
        %51 = tpu.memref_slice %arg5[%50, %c0_i32_30] : memref<384x128xf32, #tpu.memory_space<any>> -> memref<1x128xf32, #tpu.memory_space<any>>
        %52 = tpu.memref_squeeze %51 : memref<1x128xf32, #tpu.memory_space<any>> -> memref<128xf32, #tpu.memory_space<any>>
        %c0_i32_31 = arith.constant 0 : i32
        %53 = tpu.memref_slice %arg15[%47, %c0_i32_31] : memref<128x128xf32, #tpu.memory_space<vmem>> -> memref<1x128xf32, #tpu.memory_space<vmem>>
        %54 = tpu.memref_squeeze %53 : memref<1x128xf32, #tpu.memory_space<vmem>> -> memref<128xf32, #tpu.memory_space<vmem>>
        tpu.enqueue_dma source(%52 : memref<128xf32, #tpu.memory_space<any>>) target(%54 : memref<128xf32, #tpu.memory_space<vmem>>) target_semaphore(%arg16 : memref<!tpu.dma_semaphore, #tpu.memory_space<semaphore_mem>>)
      }
      %c128_i32_5 = arith.constant 128 : i32
      %c0_i32_6 = arith.constant 0 : i32
      %c128_i32_7 = arith.constant 128 : i32
      %16 = arith.addi %c0_i32_6, %c128_i32_7 : i32
      %c1_i32_8 = arith.constant 1 : i32
      scf.for %arg17 = %c0_i32_6 to %16 step %c1_i32_8  : i32 {
        %c0_i32_28 = arith.constant 0 : i32
        %c0_i32_29 = arith.constant 0 : i32
        %c0_i32_30 = arith.constant 0 : i32
        %46 = tpu.memref_slice %arg5[%c0_i32_28, %c0_i32_30] : memref<384x128xf32, #tpu.memory_space<any>> -> memref<1x128xf32, #tpu.memory_space<any>>
        %47 = tpu.memref_squeeze %46 : memref<1x128xf32, #tpu.memory_space<any>> -> memref<128xf32, #tpu.memory_space<any>>
        %c0_i32_31 = arith.constant 0 : i32
        %48 = tpu.memref_slice %arg15[%c0_i32_29, %c0_i32_31] : memref<128x128xf32, #tpu.memory_space<vmem>> -> memref<1x128xf32, #tpu.memory_space<vmem>>
        %49 = tpu.memref_squeeze %48 : memref<1x128xf32, #tpu.memory_space<vmem>> -> memref<128xf32, #tpu.memory_space<vmem>>
        tpu.wait_dma2 semaphore(%arg16 : memref<!tpu.dma_semaphore, #tpu.memory_space<semaphore_mem>>) src(%47 : memref<128xf32, #tpu.memory_space<any>>) dst(%49 : memref<128xf32, #tpu.memory_space<vmem>>)
      }
      %c0 = arith.constant 0 : index
      %c0_9 = arith.constant 0 : index
      %17 = vector.load %arg15[%c0, %c0_9] : memref<128x128xf32, #tpu.memory_space<vmem>>, vector<128x128xf32>
      %c0_10 = arith.constant 0 : index
      %c0_11 = arith.constant 0 : index
      %18 = vector.load %arg7[%c0_10, %c0_11] : memref<128x128xf32, #tpu.memory_space<vmem>>, vector<128x128xf32>
      %19 = arith.addf %17, %18 : vector<128x128xf32>
      %cst = arith.constant 0.000000e+00 : f32
      %20 = vector.broadcast %cst : f32 to vector<128x128xf32>
      %21 = arith.maximumf %19, %20 : vector<128x128xf32>
      %cst_12 = arith.constant 1.000000e-07 : f32
      %22 = vector.broadcast %cst_12 : f32 to vector<128x128xf32>
      %23 = arith.addf %21, %22 : vector<128x128xf32>
      %c0_13 = arith.constant 0 : index
      %c0_14 = arith.constant 0 : index
      %24 = vector.load %arg11[%c0_13, %c0_14] : memref<1x128xf32, #tpu.memory_space<vmem>>, vector<1x128xf32>
      %25 = vector.broadcast %24 : vector<1x128xf32> to vector<128x128xf32>
      %26 = arith.subf %23, %25 : vector<128x128xf32>
      %27 = math.exp %26 : vector<128x128xf32>
      %28 = tpu.iota {dimensions = array<i32: 0>} : vector<128x128xi32>
      %c128_i32_15 = arith.constant 128 : i32
      %29 = arith.muli %arg0, %c128_i32_15 : i32
      %30 = vector.broadcast %29 : i32 to vector<128x128xi32>
      %31 = arith.addi %28, %30 : vector<128x128xi32>
      %c0_16 = arith.constant 0 : index
      %c0_17 = arith.constant 0 : index
      %32 = vector.load %arg8[%c0_16, %c0_17] : memref<1x128xi32, #tpu.memory_space<vmem>>, vector<1x128xi32>
      %33 = vector.broadcast %32 : vector<1x128xi32> to vector<128x128xi32>
      %34 = arith.cmpi eq, %31, %33 : vector<128x128xi32>
      %35 = arith.extui %34 : vector<128x128xi1> to vector<128x128xi32>
      %36 = arith.sitofp %35 : vector<128x128xi32> to vector<128x128xf32>
      %c0_18 = arith.constant 0 : index
      %c0_19 = arith.constant 0 : index
      %37 = vector.load %arg13[%c0_18, %c0_19] : memref<128x128xf32, #tpu.memory_space<vmem>>, vector<128x128xf32>
      %38 = arith.mulf %23, %27 : vector<128x128xf32>
      %cst_20 = arith.constant dense<0.000000e+00> : vector<128x128xf32>
      %39 = tpu.matmul %36, %38, %cst_20 {dimension_numbers = #tpu.dot_dimension_numbers<[1], [0], [0], [1], [0, 0, 1, 1], [], []>} : vector<128x128xf32>, vector<128x128xf32>, vector<128x128xf32> -> vector<128x128xf32>
      %40 = arith.addf %37, %39 : vector<128x128xf32>
      %c0_21 = arith.constant 0 : index
      %c0_22 = arith.constant 0 : index
      %41 = vector.load %arg13[%c0_21, %c0_22] : memref<128x128xf32, #tpu.memory_space<vmem>>, vector<128x128xf32>
      tpu.vector_store %arg13[%c0_21, %c0_22], %40 {strides = array<i32>} : memref<128x128xf32, #tpu.memory_space<vmem>>, vector<128x128xf32>,
      %c0_23 = arith.constant 0 : index
      %c0_24 = arith.constant 0 : index
      %42 = vector.load %arg14[%c0_23, %c0_24] : memref<128x128xf32, #tpu.memory_space<vmem>>, vector<128x128xf32>
      %cst_25 = arith.constant dense<0.000000e+00> : vector<128x128xf32>
      %43 = tpu.matmul %36, %27, %cst_25 {dimension_numbers = #tpu.dot_dimension_numbers<[1], [0], [0], [1], [0, 0, 1, 1], [], []>} : vector<128x128xf32>, vector<128x128xf32>, vector<128x128xf32> -> vector<128x128xf32>
      %44 = arith.addf %42, %43 : vector<128x128xf32>
      %c0_26 = arith.constant 0 : index
      %c0_27 = arith.constant 0 : index
      %45 = vector.load %arg14[%c0_26, %c0_27] : memref<128x128xf32, #tpu.memory_space<vmem>>, vector<128x128xf32>
      tpu.vector_store %arg14[%c0_26, %c0_27], %44 {strides = array<i32>} : memref<128x128xf32, #tpu.memory_space<vmem>>, vector<128x128xf32>,
    } else {
    }
    %c5_i32 = arith.constant 5 : i32
    %8 = arith.cmpi eq, %arg1, %c5_i32 : i32
    %9 = arith.extui %8 : i1 to i32
    %c0_i32_2 = arith.constant 0 : i32
    %10 = arith.cmpi ne, %9, %c0_i32_2 : i32
    scf.if %10 {
      %c0 = arith.constant 0 : index
      %c0_3 = arith.constant 0 : index
      %11 = vector.load %arg13[%c0, %c0_3] : memref<128x128xf32, #tpu.memory_space<vmem>>, vector<128x128xf32>
      %c0_4 = arith.constant 0 : index
      %c0_5 = arith.constant 0 : index
      %12 = vector.load %arg14[%c0_4, %c0_5] : memref<128x128xf32, #tpu.memory_space<vmem>>, vector<128x128xf32>
      %cst = arith.constant 9.99999968E-21 : f32
      %13 = vector.broadcast %cst : f32 to vector<128x128xf32>
      %14 = arith.addf %12, %13 : vector<128x128xf32>
      %15 = tpu.reciprocal %14 {approx = true} : vector<128x128xf32> -> vector<128x128xf32>
      %16 = arith.mulf %11, %15 : vector<128x128xf32>
      %c0_6 = arith.constant 0 : index
      %c0_7 = arith.constant 0 : index
      %17 = vector.load %arg6[%c0_6, %c0_7] : memref<128x128xf32, #tpu.memory_space<vmem>>, vector<128x128xf32>
      %18 = arith.addf %17, %16 : vector<128x128xf32>
      %c0_8 = arith.constant 0 : index
      %c0_9 = arith.constant 0 : index
      %19 = vector.load %arg9[%c0_8, %c0_9] : memref<128x128xf32, #tpu.memory_space<vmem>>, vector<128x128xf32>
      %cst_10 = arith.constant dense<0.000000e+00> : vector<128x128xf32>
      %20 = tpu.matmul %18, %19, %cst_10 {dimension_numbers = #tpu.dot_dimension_numbers<[1], [0], [0], [1], [0, 0, 1, 1], [], []>} : vector<128x128xf32>, vector<128x128xf32>, vector<128x128xf32> -> vector<128x128xf32>
      %c0_11 = arith.constant 0 : index
      %c0_12 = arith.constant 0 : index
      %21 = vector.load %arg10[%c0_11, %c0_12] : memref<1x128xf32, #tpu.memory_space<vmem>>, vector<1x128xf32>
      %22 = vector.broadcast %21 : vector<1x128xf32> to vector<128x128xf32>
      %23 = arith.addf %20, %22 : vector<128x128xf32>
      %c0_13 = arith.constant 0 : index
      %c0_14 = arith.constant 0 : index
      %24 = vector.load %arg12[%c0_13, %c0_14] : memref<128x128xf32, #tpu.memory_space<vmem>>, vector<128x128xf32>
      tpu.vector_store %arg12[%c0_13, %c0_14], %23 {strides = array<i32>} : memref<128x128xf32, #tpu.memory_space<vmem>>, vector<128x128xf32>,
    } else {
    }
    return
  }
  func.func @transform_1(%arg0: i32, %arg1: i32, %arg2: memref<3xi32, #tpu.memory_space<smem>>, %arg3: memref<3xi32, #tpu.memory_space<smem>>, %arg4: memref<1280xi32, #tpu.memory_space<smem>>) -> (i32, i32) {
    %c0_i32 = arith.constant 0 : i32
    %c0_i32_0 = arith.constant 0 : i32
    return %arg0, %c0_i32 : i32, i32
  }
  func.func @transform_2(%arg0: i32, %arg1: i32, %arg2: memref<3xi32, #tpu.memory_space<smem>>, %arg3: memref<3xi32, #tpu.memory_space<smem>>, %arg4: memref<1280xi32, #tpu.memory_space<smem>>) -> (i32, i32) {
    %0 = arith.index_cast %arg0 : i32 to index
    %1 = memref.load %arg2[%0] : memref<3xi32, #tpu.memory_space<smem>>
    %2 = arith.index_cast %arg0 : i32 to index
    %3 = memref.load %arg3[%2] : memref<3xi32, #tpu.memory_space<smem>>
    %c1_i32 = arith.constant 1 : i32
    %4 = arith.subi %3, %c1_i32 : i32
    %c0_i32 = arith.constant 0 : i32
    %5 = arith.maxsi %4, %c0_i32 : i32
    %6 = arith.minsi %arg1, %5 : i32
    %7 = arith.addi %1, %6 : i32
    %c0_i32_0 = arith.constant 0 : i32
    %c0_i32_1 = arith.constant 0 : i32
    return %7, %c0_i32_0 : i32, i32
  }
  func.func @transform_3(%arg0: i32, %arg1: i32, %arg2: memref<3xi32, #tpu.memory_space<smem>>, %arg3: memref<3xi32, #tpu.memory_space<smem>>, %arg4: memref<1280xi32, #tpu.memory_space<smem>>) -> (i32, i32) {
    %0 = arith.index_cast %arg0 : i32 to index
    %1 = memref.load %arg2[%0] : memref<3xi32, #tpu.memory_space<smem>>
    %2 = arith.index_cast %arg0 : i32 to index
    %3 = memref.load %arg3[%2] : memref<3xi32, #tpu.memory_space<smem>>
    %c1_i32 = arith.constant 1 : i32
    %4 = arith.subi %3, %c1_i32 : i32
    %c0_i32 = arith.constant 0 : i32
    %5 = arith.maxsi %4, %c0_i32 : i32
    %6 = arith.minsi %arg1, %5 : i32
    %7 = arith.addi %1, %6 : i32
    %c0_i32_0 = arith.constant 0 : i32
    %c0_i32_1 = arith.constant 0 : i32
    return %c0_i32_0, %7 : i32, i32
  }
  func.func @transform_4(%arg0: i32, %arg1: i32, %arg2: memref<3xi32, #tpu.memory_space<smem>>, %arg3: memref<3xi32, #tpu.memory_space<smem>>, %arg4: memref<1280xi32, #tpu.memory_space<smem>>) -> (i32, i32) {
    %c0_i32 = arith.constant 0 : i32
    %c0_i32_0 = arith.constant 0 : i32
    %c0_i32_1 = arith.constant 0 : i32
    return %c0_i32, %c0_i32_0 : i32, i32
  }
  func.func @transform_5(%arg0: i32, %arg1: i32, %arg2: memref<3xi32, #tpu.memory_space<smem>>, %arg3: memref<3xi32, #tpu.memory_space<smem>>, %arg4: memref<1280xi32, #tpu.memory_space<smem>>) -> (i32, i32) {
    %c0_i32 = arith.constant 0 : i32
    %c0_i32_0 = arith.constant 0 : i32
    %c0_i32_1 = arith.constant 0 : i32
    return %c0_i32, %c0_i32_0 : i32, i32
  }
  func.func @transform_6(%arg0: i32, %arg1: i32, %arg2: memref<3xi32, #tpu.memory_space<smem>>, %arg3: memref<3xi32, #tpu.memory_space<smem>>, %arg4: memref<1280xi32, #tpu.memory_space<smem>>) -> (i32, i32) {
    %c0_i32 = arith.constant 0 : i32
    %c0_i32_0 = arith.constant 0 : i32
    %c0_i32_1 = arith.constant 0 : i32
    return %c0_i32, %c0_i32_0 : i32, i32
  }
  func.func @transform_7(%arg0: i32, %arg1: i32, %arg2: memref<3xi32, #tpu.memory_space<smem>>, %arg3: memref<3xi32, #tpu.memory_space<smem>>, %arg4: memref<1280xi32, #tpu.memory_space<smem>>) -> (i32, i32) {
    %c0_i32 = arith.constant 0 : i32
    %c0_i32_0 = arith.constant 0 : i32
    return %arg0, %c0_i32 : i32, i32
  }
}

</mosaic_0001>

<bundles_post_ra>
// kernel: tpu_custom_call.1
= control target key start
LH: loop header
LB: loop body
LE: loop exit
PB: predicated region body
PF: predicated region fallthrough
CT: control target
= control target key end

     0   :  { %s2163_s19 = smov [#allocation7]   ;;  %s2164_s20 = smov [#allocation8]   ;;  %s2915_s0 = inlined_call_operand.hbm [shape: s32[3], index: 0, kind: input, shape index: {}]   ;;  %s2916_s3 = inlined_call_operand.hbm [shape: f32[384,128], index: 3, kind: input, shape index: {}]   ;;  %s2917_s4 = inlined_call_operand.hbm [shape: f32[384,128], index: 4, kind: input, shape index: {}]   ;;  %s2918_s5 = inlined_call_operand.hbm [shape: f32[1280,128], index: 5, kind: input, shape index: {}]   ;;  %s2919_s6 = inlined_call_operand.hbm [shape: s32[1,1280], index: 6, kind: input, shape index: {}]   ;;  %s2920_s7 = inlined_call_operand.hbm [shape: f32[128,128], index: 7, kind: input, shape index: {}]   ;;  %s2921_s8 = inlined_call_operand.vmem [shape: f32[1,128], index: 8, kind: input, shape index: {}]   ;;  %s2922_s9 = inlined_call_operand.vmem [shape: f32[1,128], index: 9, kind: input, shape index: {}]   ;;  %s2923_s10 = inlined_call_operand.hbm [shape: f32[384,128], index: 10, kind: output, shape index: {}]   ;;  %s2924_s1 = inlined_call_operand.hbm [shape: s32[3], index: 1, kind: input, shape index: {}]   ;;  %s2925_s2 = inlined_call_operand.hbm [shape: s32[1280], index: 2, kind: input, shape index: {}]  }
   0x1   :  { %2946 = sst [smem:[#allocation51_spill]] %s2916_s3  ;;  %s16_s15 = sshll.u32 %s2915_s0, 4  ;;  %s17_s15 = int_to_ptr.hbm [resolvable:$true] %s16_s15 }
   0x2   :  { %2947 = sst [smem:[#allocation52_spill]] %s2917_s4  ;;  %s21_s18 = sshll.u32 %s2924_s1, 4  ;;  %s22_s18 = int_to_ptr.hbm [resolvable:$true] %s21_s18 }
   0x3   :  { %2948 = sst [smem:[#allocation53_spill]] %s2918_s5  ;;  %s26_s23 = sshll.u32 %s2925_s2, 4  ;;  %s27_s23 = int_to_ptr.hbm [resolvable:$true] %s26_s23 }
   0x4   :  { %2949 = sst [smem:[#allocation54_spill]] %s2919_s6  ;;  %s2165_s24 = smov [#allocation9]  }
   0x5   :  { %2950 = sst [smem:[#allocation55_spill]] %s2920_s7 }
   0x6   :  { %2951 = sst [smem:[#allocation56_spill]] %s2921_s8 }
   0x7   :  { %2952 = sst [smem:[#allocation57_spill]] %s2922_s9 }
   0x8   :  { %2953 = sst [smem:[#allocation58_spill]] %s2923_s10 }
   0x9   :  { %19 = dma.hbm_to_smem %s17_s15, 16, %s2163_s19, [#allocation6] }
   0xa   :  { %24 = dma.hbm_to_smem %s22_s18, 16, %s2164_s20, [#allocation6] }
   0xb   :  { %29 = dma.hbm_to_smem %s27_s23, 160, %s2165_s24, [#allocation6] }
   0xc   :  { %2075 = dma.done.wait [#allocation6], 192 }
   0xd   :  { %2076 = vsyncadd [#allocation6], 4294967104 }
   0xe   :  { %32 = sfence }
   0xf   :  { %33 = vsyncpa [#allocation11], 0 }
  0x10   :  { %35 = vsyncpa [#allocation11 + $0x1], 0 }
  0x11   :  { %36 = vsyncpa [#allocation14], 0 }
  0x12   :  { %38 = vsyncpa [#allocation14 + $0x1], 0 }
  0x13   :  { %39 = vsyncpa [#allocation17], 0 }
  0x14   :  { %40 = vsyncpa [#allocation12], 0 }
  0x15   :  { %42 = vsyncpa [#allocation12 + $0x1], 0  ;;  %s2238_s0 = smov 0   ;;  %s2240_s1 = smov 0  }
  0x16   :  { %s2242_s25 = smov 0   ;;  %s2244_s2 = smov 0  }
  0x17   :  { %s2246_s26 = smov 0   ;;  %s2248_s27 = smov 0  }
  0x18   :  { %s2250_s28 = smov 0   ;;  %s2252_s29 = smov 0  }
  0x19   :  { %s2254_s30 = smov 0   ;;  %s2256_s11 = smov 0  }
  0x1a   :  { %s2258_s12 = smov 0   ;;  %s2260_s13 = smov 0  }
  0x1b   :  { %s2262_s14 = smov 0   ;;  %s2264_s15 = smov 0  }
  0x1c LB: > { %2954 = sst [smem:[#allocation38_spill]] %s2117_s26  ;;  %s57_s16 = sadd.s32 1, %s2145_s13  ;;  %s2153_s15 = sphi %s2264_s15, %s48_s15   ;;  %s2149_s14 = sphi %s2262_s14, %s3026_s14   ;;  %s2145_s13 = sphi %s2260_s13, %s3034_s13   ;;  %s2141_s12 = sphi %s2258_s12, %s3024_s12   ;;  %s2137_s11 = sphi %s2256_s11, %s3033_s11   ;;  %s2133_s30 = sphi %s2254_s30, %s3023_s30   ;;  %s2129_s29 = sphi %s2252_s29, %s3032_s29   ;;  %s2125_s28 = sphi %s2250_s28, %s3031_s28   ;;  %s2121_s27 = sphi %s2248_s27, %s3021_s27   ;;  %s2117_s26 = sphi %s2246_s26, %s3020_s26   ;;  %s2113_s2 = sphi %s2244_s2, %s3030_s2   ;;  %s2109_s25 = sphi %s2242_s25, %s3029_s25   ;;  %s2105_s1 = sphi %s2240_s1, %s3028_s1   ;;  %s2101_s0 = sphi %s2238_s0, %s3027_s0  }
  0x1d   : > { %2955 = sst [smem:[#allocation39_spill]] %s2121_s27  ;;  %s60_s17 = sadd.s32 1, %s2149_s14 }
  0x1e   : > { %2956 = sst [smem:[#allocation40_spill]] %s2133_s30  ;;  %p58_p0 = scmp.ge.s32.totalorder %s57_s16, 6 }
  0x1f   : > { %2957 = sst [smem:[#allocation41_spill]] %s2137_s11  ;;  %p2933_p1 = scmp.eq.s32.totalorder %s2153_s15, 0 }
  0x20   : > { %2958 = sst [smem:[#allocation42_spill]] %s2141_s12  ;;  %s3036_s16 = smov (%p58_p0, %s57_s16), 0 }
  0x21   : > { %2959 = sst [smem:[#allocation43_spill]] %s2149_s14  ;;  %s3038_s17 = smov (!%p58_p0, %s60_s17), %s2149_s14 }
  0x22   : > { %s2312_s18 = sld [smem:[#allocation7 + %s2149_s14]]  ;;  %p116_p2 = scmp.ne.s32.totalorder %s2121_s27, %s2117_s26 }
  0x23   : > { %2960 = sst [smem:[#allocation44_spill]] %s3036_s16  ;;  %p62_p3 = scmp.ge.s32.totalorder %s3038_s17, 3 }
  0x24   : > { %s91_s20 = sld [smem:[#allocation8 + %s2149_s14]]  ;;  %p122_p4 = scmp.ne.s32.totalorder %s2117_s26, %s2113_s2 }
  0x25   : > { %p2325_p5 = por %p116_p2, %p2933_p1  ;;  %s3040_s17 = smov (%p62_p3, %s3038_s17), 0 }
  0x26   : > { %2962 = sst [smem:[#allocation45_spill]] %s3040_s17  ;;  %p2934_p6 = scmp.lt.s32.totalorder %s2153_s15, 18 }
  0x27   : > { %s98_s22 = sld [smem:[#allocation7 + %s3040_s17]]  ;;  %s321_s10 = sand.u32 1, %s2121_s27  }
  0x28   : > { %s99_s24 = sld [smem:[#allocation8 + %s3040_s17]]  ;;  %s1396_s8 = sshll.u32 %s321_s10, 7 }
  0x29   : > { %p2340_p8 = pnand %p2934_p6, %p2325_p5  ;;  %s323_s3 = scalar_lea.vmem [#allocation13], %s1396_s8 }
  0x2a   : > { %s1386_s23 = sadd.s32 4294967295, %s91_s20  ;;  %s2345_s19 = sshll.u32 %s323_s3, 4 }
  0x2b   : > { %p93_p7 = scmp.gt.s32.totalorder %s1386_s23, 0  ;;  %2964 = sst [smem:[#allocation46_spill]] %s2345_s19 }
  0x2c   : > { %s1551_s11 = scalar_select %p2325_p5, [#allocation7], [#allocation23] }
  0x2d   : > { %s3042_s23 = smov (!%p93_p7, %s1386_s23), 0  ;;  %s2369_s6 = sadd.s32 4294967295, %s2153_s15  }
  0x2e   : > { %p95_p9 = scmp.lt.s32.totalorder %s2145_s13, %s3042_s23  ;;  %s1387_s20 = sadd.s32 4294967295, %s99_s24 }
  0x2f   : > { %p101_p10 = scmp.gt.s32.totalorder %s1387_s20, 0  ;;  %s3046_s11 = smov (!%p2934_p6, %s1551_s11), [#allocation27] }
  0x30   : > { %s96_s12 = scalar_select %p95_p9, %s2145_s13, %s3042_s23 }
  0x31   : > { %s3044_s20 = smov (!%p101_p10, %s1387_s20), 0  ;;  %p2935_p13 = scmp.eq.s32.totalorder %s2369_s6, 0 }
  0x32   : > { %s97_s10 = sadd.s32 %s96_s12, %s2312_s18  ;;  %p103_p11 = scmp.lt.s32.totalorder %s3036_s16, %s3044_s20 }
  0x33   : > { %s1552_s8 = scalar_select %p2325_p5, %s2149_s14, 0 }
  0x34   : > { %s104_s3 = scalar_select %p103_p11, %s3036_s16, %s3044_s20 }
  0x35   : > { %s3048_s8 = smov (!%p2934_p6, %s1552_s8), 0  ;;  %s2965_s12 = sadd.s32 1, %s2121_s27 }
  0x36   : > { %s105_s23 = sadd.s32 %s104_s3, %s98_s22  ;;  %s2366_s19 = sld [smem:[%s3046_s11 + %s3048_s8]] }
  0x37   : > { %s106_s24 = ssub.s32 %s97_s10, %s105_s23  ;;  %p1390_p0 = scmp.ge.s32.totalorder %s2153_s15, 1 }
  0x38   : > { %p107_p12 = scmp.eq.s32.totalorder %s106_s24, 0  ;;  %p2382_p2 = por %p122_p4, %p2935_p13 }
  0x39   : > { %s1553_s4 = scalar_select %p2325_p5, [#allocation8], [#allocation24] }
  0x3a   : > { %s2364_s18 = scalar_select %p107_p12, %s2121_s27, %s2965_s12  }
  0x3b   : > { %s3050_s4 = smov (!%p2934_p6, %s1553_s4), [#allocation28]  ;;  %p264_p3 = scmp.lt.s32.totalorder %s2153_s15, 19 }
  0x3c   : > { %2966 = sst [smem:[#allocation47_spill]] %s2364_s18  ;;  %s2166_s2 = smov [#allocation16]  }
  0x3d   : > { %s2967_s22 = scalar_select %p2382_p2, 1, 0 }
  0x3e   : > { %s325_s11 = sld [smem:[%s3050_s4 + %s3048_s8]]  ;;  %p2387_p7 = pnand %p1390_p0, %p264_p3 }
  0x3f   : > { %2968 = sst [smem:[#allocation48_spill]] %s2967_s22  ;;  %s277_s4 = sshll.u32 %s2166_s2, 4  ;;  %s278_s4 = int_to_ptr.vmem [resolvable:$true] %s277_s4 }
  0x40   : > { %s2970_s7 = sld [smem:[#allocation55_spill]]  ;;  %p1568_p4 = pneg %p2387_p7 }
  0x41   : > { %s2939_s23 = smov 128   ;;  %s2940_s24 = smov 8  }
  0x42   : > { %p1569_p5 = pnand %p1568_p4, %p2935_p13  ;;  %s64_s20 = ssub.s32 %s2149_s14, %s3040_s17 }
  0x43   : > { %p2406_p11 = scmp.eq.s32.totalorder %s64_s20, 0  ;;  %p2937_p12 = scmp.ne.s32.totalorder %s2133_s30, %s2129_s29 }
  0x44   : > { %s1397_s8 = sadd.s32 4294967295, %s325_s11  ;;  %p2936_p0 = scmp.ne.s32.totalorder %s2129_s29, %s2125_s28 }
  0x45   : > { %p327_p9 = scmp.gt.s32.totalorder %s1397_s8, 0  ;;  %s2972_s5 = sld [smem:[#allocation53_spill]] }
  0x46   : > { %s275_s3 = sshll.u32 %s2970_s7, 4  ;;  %p2424_p3 = por %p2933_p1, %p2937_p12  ;;  %s276_s3 = int_to_ptr.hbm [resolvable:$true] %s275_s3 }
  0x47   : > { %1571 = dma.hbm_to_vmem [thread:$0]  (!%p1569_p5), %s276_s3, 2048, %s278_s4, [#allocation17], %s2939_s23, %s2939_s23, %s2940_s24  }
  0x48   : > { %s3052_s8 = smov (!%p327_p9, %s1397_s8), 0  ;;  %p2433_p4 = por %p2935_p13, %p2936_p0 }
  0x49   : > { %p329_p10 = scmp.lt.s32.totalorder %s2145_s13, %s3052_s8 }
  0x4b   : > { %s330_s11 = scalar_select %p329_p10, %s2145_s13, %s3052_s8 }
  0x4c   : > { %p1873_p10 = pneg %p2340_p8 }
  0x4d   : > { %s331_s7 = sadd.s32 %s330_s11, %s2366_s19 }
  0x4e   : > { %s1466_s18 = sshll.u32 %s331_s7, 7  ;;  %s2975_s7 = sand.u32 1, %s2153_s15  }
  0x4f   : > { %s336_s3 = scalar_lea.hbm %s2972_s5, %s1466_s18  ;;  %s2440_s19 = scalar_lea.sflag [#allocation14], %s2975_s7 }
  0x50   : > { %s337_s8 = sshll.u32 %s336_s3, 4  ;;  %s1876_s3 = scalar_lea.hbm %s2972_s5, 1280  ;;  %s338_s8 = int_to_ptr.hbm [resolvable:$true] %s337_s8 }
  0x51   : > { %s1869_s27 = sshra.s32 %s338_s8, 4  ;;  %s1870_s27 = int_to_ptr.hbm [resolvable:$true] %s1869_s27 }
  0x52   : > { %s1871_s18 = scalar_lea.hbm %s1870_s27, 128  ;;  %p1877_p13 = scmp.lt.s32.totalorder %s1870_s27, %s2972_s5 }
  0x53   : > { %p1872_p9 = scmp.ne.s32.totalorder %s1870_s27, %s1871_s18  ;;  %p1878_p0 = scmp.lt.s32.totalorder %s1876_s3, %s1871_s18 }
  0x55   : > { %p1874_p1 = pnand %p1873_p10, %p1872_p9  ;;  %p1879_p5 = por %p1878_p0, %p1877_p13 }
  0x57   : > { %p1875_p6 = pneg %p1874_p1 }
  0x59   : > { %p1880_p12 = pnand %p1879_p5, %p1875_p6 }
  0x5b   : > { %1883 = shalt.err (!%p1880_p12)
}
  0x5c   : > { %s2976_s7 = sld [smem:[#allocation46_spill]]  ;;  %s2978_s9 = sadd.s32 1, %s2133_s30 }
  0x5d   : > { %s2463_s12 = scalar_select %p2406_p11, %s2133_s30, %s2978_s9  }
  0x5e   : > { %p2980_p1 = scmp.ne.s32.totalorder %s2133_s30, %s2129_s29  ;;  %p2981_p6 = scmp.eq.s32.totalorder %s2369_s6, 17 }
  0x5f   : > { %2979 = sst [smem:[#allocation49_spill]] %s2463_s12  ;;  %s2983_s27 = sadd.s32 4294967294, %s2153_s15  }
  0x60   : > { %p2470_p13 = por %p2981_p6, %p2980_p1  ;;  %p257_p12 = scmp.eq.s32.totalorder %s2983_s27, 17 }
  0x61   : > { %s297_s18 = sand.u32 1, %s2133_s30   ;;  %s2986_s3 = sld [smem:[#allocation52_spill]] }
  0x62   : > { %s2977_s26 = int_to_ptr.vmem [resolvable:$true] %s2976_s7  ;;  %p2987_p0 = scmp.lt.s32.totalorder %s2153_s15, 18 }
  0x63   : > { %1582 = dma.hbm_to_vmem [thread:$0]  (!%p2340_p8), %s338_s8, 2048, %s2977_s26, %s2440_s19, %s2939_s23, %s2939_s23, %s2940_s24  }
  0x64   : > { %s1465_s26 = sshll.u32 %s2149_s14, 7  ;;  %p2984_p8 = scmp.ne.s32.totalorder %s2129_s29, %s2125_s28 }
  0x65   : > { %s1393_s8 = sshll.u32 %s297_s18, 7  ;;  %p1573_p5 = pnand %p2987_p0, %p2424_p3 }
  0x66   : > { %p2481_p11 = por %p257_p12, %p2984_p8  ;;  %s301_s27 = scalar_lea.vmem [#allocation10], %s1393_s8 }
  0x67   : > { %s306_s7 = scalar_lea.hbm %s2986_s3, %s1465_s26  ;;  %s309_s23 = sshll.u32 %s301_s27, 4  ;;  %s310_s23 = int_to_ptr.vmem [resolvable:$true] %s309_s23 }
  0x68   : > { %s2985_s10 = scalar_select %p2481_p11, 1, 0 }
  0x69   : > { %s307_s9 = sshll.u32 %s306_s7, 4  ;;  %s298_s24 = scalar_lea.sflag [#allocation11], %s297_s18  ;;  %s308_s9 = int_to_ptr.hbm [resolvable:$true] %s307_s9 }
  0x6a   : > { %s2988_s5 = smov 8   ;;  %s2989_s12 = smov 128  }
  0x6b   : > { %1575 = dma.hbm_to_vmem [thread:$0]  (!%p1573_p5), %s308_s9, 2048, %s310_s23, %s298_s24, %s2989_s12, %s2989_s12, %s2988_s5  }
  0x6c   : > { %s133_s30 = sld [smem:[#allocation8 + %s2149_s14]]  ;;  %p158_p9 = scmp.ne.s32.totalorder %s2109_s25, %s2105_s1 }
  0x6d   : > { %s141_s26 = sld [smem:[#allocation8 + %s3040_s17]]  ;;  %p164_p10 = scmp.ne.s32.totalorder %s2105_s1, %s2101_s0 }
  0x6e   : > { %p2990_p1 = scmp.eq.s32.totalorder %s2369_s6, 0  ;;  %s132_s4 = sld [smem:[#allocation7 + %s2149_s14]] }
  0x6f   : > { %p2992_p3 = scmp.eq.s32.totalorder %s2153_s15, 0  ;;  %s140_s5 = sld [smem:[#allocation7 + %s3040_s17]] }
  0x70   : > { %p2503_p6 = por %p164_p10, %p2990_p1  ;;  %s151_s9 = sadd.s32 1, %s2109_s25 }
  0x71   : > { %p2510_p12 = por %p158_p9, %p2992_p3 }
  0x72   : > { %s1388_s18 = sadd.s32 4294967295, %s133_s30 }
  0x73   : > { %p135_p8 = scmp.gt.s32.totalorder %s1388_s18, 0  ;;  %s1389_s0 = sadd.s32 4294967295, %s141_s26 }
  0x74   : > { %p2519_p5 = pnand %p2987_p0, %p2510_p12  ;;  %p143_p9 = scmp.gt.s32.totalorder %s1389_s0, 0 }
  0x75   : > { %s3054_s18 = smov (!%p135_p8, %s1388_s18), 0  ;;  %p2996_p8 = pmov %p2987_p0 }
  0x76   : > { %p137_p10 = scmp.lt.s32.totalorder %s2145_s13, %s3054_s18  ;;  %s3056_s0 = smov (!%p143_p9, %s1389_s0), 0 }
  0x77   : > { %p145_p1 = scmp.lt.s32.totalorder %s3036_s16, %s3056_s0  ;;  %p2997_p9 = pmov %p2987_p0 }
  0x78   : > { %s138_s30 = scalar_select %p137_p10, %s2145_s13, %s3054_s18 }
  0x79   : > { %s146_s12 = scalar_select %p145_p1, %s3036_s16, %s3056_s0 }
  0x7a   : > { %s139_s24 = sadd.s32 %s138_s30, %s132_s4  ;;  %s351_s0 = sand.u32 1, %s2109_s25  }
  0x7b   : > { %s1557_s11 = scalar_select %p2510_p12, %s2149_s14, 0 }
  0x7c   : > { %s147_s3 = sadd.s32 %s146_s12, %s140_s5  ;;  %s2998_s16 = sld [smem:[#allocation54_spill]] }
  0x7d   : > { %s148_s7 = ssub.s32 %s139_s24, %s147_s3  ;;  %s3058_s11 = smov (!%p2996_p8, %s1557_s11), 0 }
  0x7e   : > { %p149_p3 = scmp.eq.s32.totalorder %s148_s7, 0  ;;  %s352_s24 = scalar_lea.vmem [#allocation15], %s351_s0 }
  0x7f   : > { %s1558_s26 = scalar_select %p2510_p12, [#allocation8], [#allocation26] }
  0x80   : > { %s2532_s27 = scalar_select %p149_p3, %s2109_s25, %s151_s9  }
  0x81   : > { %s3060_s26 = smov (!%p2987_p0, %s1558_s26), [#allocation30]  ;;  %s367_s12 = sshll.u32 %s352_s24, 4  ;;  %s368_s12 = int_to_ptr.vmem [resolvable:$true] %s367_s12 }
  0x82   : > { %2995 = sst [smem:[#allocation50_spill]] %s2532_s27  ;;  %p1933_p3 = pneg %p2519_p5 }
  0x83   : > { %s1556_s18 = scalar_select %p2510_p12, [#allocation7], [#allocation25] }
  0x84   : > { %s354_s4 = sld [smem:[%s3060_s26 + %s3058_s11]] }
  0x85   : > { %s3062_s18 = smov (!%p2997_p9, %s1556_s18), [#allocation29] }
  0x86   : > { %s353_s30 = sld [smem:[%s3062_s18 + %s3058_s11]] }
  0x8a   : > { %s1400_s5 = sadd.s32 4294967295, %s354_s4  ;;  %s1936_s4 = scalar_lea.hbm %s2998_s16, 10 }
  0x8b   : > { %p356_p10 = scmp.gt.s32.totalorder %s1400_s5, 0 }
  0x8d   : > { %s3064_s5 = smov (!%p356_p10, %s1400_s5), 0 }
  0x8e   : > { %p358_p1 = scmp.lt.s32.totalorder %s2145_s13, %s3064_s5 }
  0x90   : > { %s359_s3 = scalar_select %p358_p1, %s2145_s13, %s3064_s5 }
  0x92   : > { %s360_s7 = sadd.s32 %s359_s3, %s353_s30 }
  0x93   : > { %s363_s14 = scalar_lea.hbm %s2998_s16, %s360_s7 }
  0x94   : > { %s365_s22 = sshll.u32 %s363_s14, 4  ;;  %s366_s22 = int_to_ptr.hbm [resolvable:$true] %s365_s22 }
  0x95   : > { %s1929_s26 = sshra.s32 %s366_s22, 4  ;;  %s1930_s26 = int_to_ptr.hbm [resolvable:$true] %s1929_s26 }
  0x96   : > { %s1931_s27 = scalar_lea.hbm %s1930_s26, 1  ;;  %p1937_p9 = scmp.lt.s32.totalorder %s1930_s26, %s2998_s16 }
  0x97   : > { %p1932_p12 = scmp.ne.s32.totalorder %s1930_s26, %s1931_s27  ;;  %p1938_p10 = scmp.lt.s32.totalorder %s1936_s4, %s1931_s27 }
  0x99   : > { %p1934_p8 = pnand %p1933_p3, %p1932_p12  ;;  %p1939_p1 = por %p1938_p10, %p1937_p9 }
  0x9b   : > { %p1935_p0 = pneg %p1934_p8 }
  0x9d   : > { %p1940_p11 = pnand %p1939_p1, %p1935_p0 }
  0x9f   : > { %1943 = shalt.err (!%p1940_p11)
}
  0xa0   : > { %1589 = dma.hbm_to_vmem [thread:$0]  (!%p2519_p5), %s366_s22, 16, %s368_s12, %s2440_s19  }
  0xa1   : > { %376 = sbr.rel (%p2387_p7) target bundleno = 767 (0x2ff), region = 44  ;;  %s2564_s14 = sand.u32 (!%p2387_p7), 1, %s2129_s29  }
  0xa2   : > { %s1402_s17 = sshll.u32 (!%p2387_p7), %s2564_s14, 7  ;;  %s379_s30 = scalar_lea.sflag (!%p2387_p7), [#allocation11], %s2564_s14 }
  0xa3   : > { %s2568_s24 = scalar_lea.vmem (!%p2387_p7), [#allocation10], %s1402_s17 }
  0xa6   : > { %2078 = dma.done.wait (%p2433_p4), %s379_s30, 2048  }
  0xa7   : > { %2080 = vsyncadd (%p2433_p4), %s379_s30, 4294965248  ;;  %s2999_s19 = sld [smem:[#allocation38_spill]]  ;;  %s388_s21 = sand.u32 1, %s2369_s6  }
  0xa8   : > { %s389_s3 = scalar_lea.sflag [#allocation14], %s388_s21 }
  0xad   : > { %s390_s27 = sand.u32 1, %s2999_s19  }
  0xae   : > { %s1403_s12 = sshll.u32 %s390_s27, 7 }
  0xaf   : > { %s2576_s7 = scalar_lea.vmem [#allocation13], %s1403_s12 }
  0xb0   : > { %2082 = dma.done.wait (%p2382_p2), %s389_s3, 2048  }
  0xb1   : > { %2084 = vsyncadd (%p2382_p2), %s389_s3, 4294965248  ;;  %s400_s9 = sand.u32 1, %s2105_s1  }
  0xb2   : > { %s2583_s22 = scalar_lea.vmem [#allocation15], %s400_s9 }
  0xb3   : > { %2086 = dma.done.wait (%p2503_p6), %s389_s3, 16  }
  0xb4   : > { %2088 = vsyncadd (%p2503_p6), %s389_s3, 4294967280  ;;  %p3001_p7 = scmp.eq.s32.totalorder %s2369_s6, 0 }
  0xb6   : > { %2090 = dma.done.wait (%p3001_p7), [#allocation17], 2048   ;;  %p3002_p4 = pmov %p3001_p7 }
  0xb7   : > { %s2593_s20 = scalar_lea.vmem [#allocation18], %s1402_s17  ;;  %s3003_s26 = sld [smem:[#allocation41_spill]] }
  0xb8   : > { %2092 = vsyncadd (%p3002_p4), [#allocation17], 4294965248 }
  0xbd   : > { %p1406_p2 = scmp.ne.s32.totalorder %s3003_s26, 0 }
  0xbf   : > { %467 = sbr.rel (%p1406_p2) target bundleno = 229 (0xe5), region = 64 }
  0xc4   : > { %v2169_v0 = vmov 0.0  }
  0xc5   : > { %468 = vst [vmem:[#allocation2 + $0x30] sm:$0xff] %v2169_v0 }
  0xc6   : > { %469 = vst [vmem:[#allocation2] sm:$0xff] %v2169_v0 }
  0xc7   : > { %470 = vst [vmem:[#allocation2 + $0x58] sm:$0xff] %v2169_v0 }
  0xc8   : > { %471 = vst [vmem:[#allocation2 + $0x18] sm:$0xff] %v2169_v0 }
  0xc9   : > { %472 = vst [vmem:[#allocation2 + $0x50] sm:$0xff] %v2169_v0 }
  0xca   : > { %473 = vst [vmem:[#allocation2 + $0x68] sm:$0xff] %v2169_v0 }
  0xcb   : > { %474 = vst [vmem:[#allocation2 + $0x8] sm:$0xff] %v2169_v0 }
  0xcc   : > { %475 = vst [vmem:[#allocation2 + $0x48] sm:$0xff] %v2169_v0 }
  0xcd   : > { %476 = vst [vmem:[#allocation2 + $0x40] sm:$0xff] %v2169_v0 }
  0xce   : > { %477 = vst [vmem:[#allocation2 + $0x20] sm:$0xff] %v2169_v0 }
  0xcf   : > { %478 = vst [vmem:[#allocation2 + $0x10] sm:$0xff] %v2169_v0 }
  0xd0   : > { %479 = vst [vmem:[#allocation2 + $0x38] sm:$0xff] %v2169_v0 }
  0xd1   : > { %480 = vst [vmem:[#allocation2 + $0x60] sm:$0xff] %v2169_v0 }
  0xd2   : > { %481 = vst [vmem:[#allocation2 + $0x70] sm:$0xff] %v2169_v0 }
  0xd3   : > { %482 = vst [vmem:[#allocation2 + $0x78] sm:$0xff] %v2169_v0 }
  0xd4   : > { %483 = vst [vmem:[#allocation2 + $0x28] sm:$0xff] %v2169_v0 }
  0xd5   : > { %484 = vst [vmem:[#allocation3 + $0x28] sm:$0xff] %v2169_v0 }
  0xd6   : > { %485 = vst [vmem:[#allocation3 + $0x68] sm:$0xff] %v2169_v0 }
  0xd7   : > { %486 = vst [vmem:[#allocation3 + $0x10] sm:$0xff] %v2169_v0 }
  0xd8   : > { %487 = vst [vmem:[#allocation3 + $0x40] sm:$0xff] %v2169_v0 }
  0xd9   : > { %488 = vst [vmem:[#allocation3 + $0x48] sm:$0xff] %v2169_v0 }
  0xda   : > { %489 = vst [vmem:[#allocation3 + $0x30] sm:$0xff] %v2169_v0 }
  0xdb   : > { %490 = vst [vmem:[#allocation3 + $0x70] sm:$0xff] %v2169_v0 }
  0xdc   : > { %491 = vst [vmem:[#allocation3 + $0x38] sm:$0xff] %v2169_v0 }
  0xdd   : > { %492 = vst [vmem:[#allocation3 + $0x20] sm:$0xff] %v2169_v0 }
  0xde   : > { %493 = vst [vmem:[#allocation3 + $0x78] sm:$0xff] %v2169_v0 }
  0xdf   : > { %494 = vst [vmem:[#allocation3 + $0x18] sm:$0xff] %v2169_v0 }
  0xe0   : > { %495 = vst [vmem:[#allocation3 + $0x58] sm:$0xff] %v2169_v0 }
  0xe1   : > { %496 = vst [vmem:[#allocation3] sm:$0xff] %v2169_v0 }
  0xe2   : > { %497 = vst [vmem:[#allocation3 + $0x8] sm:$0xff] %v2169_v0 }
  0xe3   : > { %498 = vst [vmem:[#allocation3 + $0x60] sm:$0xff] %v2169_v0 }
  0xe4   : > { %499 = vst [vmem:[#allocation3 + $0x50] sm:$0xff] %v2169_v0 }
  0xe5 PF: > { %s3004_s6 = sld [smem:[#allocation42_spill]] }
  0xe6   : > { %s3005_s11 = sld [smem:[#allocation41_spill]] }
  0xeb   : > { %s500_s8 = sld [smem:[#allocation8 + %s3004_s6]] }
  0xf1   : > { %p1407_p11 = scmp.ge.s32.totalorder %s3005_s11, %s500_s8 }
  0xf2   : > { %s3006_s18 = sld [smem:[#allocation42_spill]] (!%p1407_p11)  ;;  %s2602_s30 = smov (!%p1407_p11), 0  }
  0xf3   : > { %504 = sbr.rel (%p1407_p11) target bundleno = 540 (0x21c), region = 68  ;;  %s3007_s4 = sld [smem:[#allocation41_spill]] (!%p1407_p11) }
  0xf8   : > { %s505_s0 = sld [smem:[#allocation7 + %s3006_s18]] }
  0xfe   : > { %s506_s5 = sadd.s32 %s3007_s4, %s505_s0 }
  0xff   : > { %s2600_s17 = sshll.u32 %s506_s5, 7 }
 0x100 LB: >> { %s514_s19 = sadd.s32 %s2157_s30, %s2600_s17  ;;  %s517_s21 = scalar_lea.vmem [#allocation4], %s2157_s30  ;;  %s2157_s30 = sphi %s2602_s30, %s513_s30  }
 0x101   : >> { %s515_s23 = sld [smem:[#allocation9 + %s514_s19]]  ;;  %s527_s27 = sshll.u32 %s517_s21, 4  ;;  %s528_s27 = int_to_ptr.vmem [resolvable:$true] %s527_s27 }
 0x102   : >> { %s3008_s9 = sld [smem:[#allocation51_spill]] }
 0x108   : >> { %s516_s26 = scalar_lea.hbm %s3008_s9, %s515_s23  ;;  %s1963_s0 = scalar_lea.hbm %s3008_s9, 384 }
 0x109   : >> { %s525_s6 = sshll.u32 %s516_s26, 4  ;;  %s526_s6 = int_to_ptr.hbm [resolvable:$true] %s525_s6 }
 0x10a   : >> { %s1959_s8 = sshra.s32 %s526_s6, 4  ;;  %s1960_s8 = int_to_ptr.hbm [resolvable:$true] %s1959_s8 }
 0x10b   : >> { %s1961_s11 = scalar_lea.hbm %s1960_s8, 1  ;;  %p1964_p5 = scmp.lt.s32.totalorder %s1960_s8, %s3008_s9 }
 0x10c   : >> { %p1962_p6 = scmp.ne.s32.totalorder %s1960_s8, %s1961_s11  ;;  %p1965_p12 = scmp.lt.s32.totalorder %s1963_s0, %s1961_s11 }
 0x10e   : >> { %p1966_p3 = por %p1965_p12, %p1964_p5 }
 0x110   : >> { %p1967_p8 = pnand %p1966_p3, %p1962_p6 }
 0x112   : >> { %1970 = shalt.err (!%p1967_p8)  }
 0x113   : >> { %s1971_s19 = sshra.s32 %s528_s27, 4  ;;  %s2170_s21 = smov [#allocation4]   ;;  %s1972_s19 = int_to_ptr.vmem [resolvable:$true] %s1971_s19 }
 0x114   : >> { %s1973_s23 = scalar_lea.vmem %s1972_s19, 1  ;;  %s1975_s12 = scalar_lea.vmem %s2170_s21, 128 }
 0x115   : >> { %p1974_p0 = scmp.ne.s32.totalorder %s1972_s19, %s1973_s23  ;;  %p1976_p9 = scmp.lt.s32.totalorder %s1972_s19, [#allocation4] }
 0x116   : >> { %p1977_p10 = scmp.lt.s32.totalorder %s1975_s12, %s1973_s23 }
 0x118   : >> { %p1978_p1 = por %p1977_p10, %p1976_p9 }
 0x11a   : >> { %p1979_p7 = pnand %p1978_p1, %p1974_p0 }
 0x11c   : >> { %1982 = shalt.err (!%p1979_p7)  }
 0x11d   : >> { %530 = dma.hbm_to_vmem [thread:$0]  %s526_s6, 16, %s528_s27, [#allocation5] }
 0x11e   : >> { %s513_s30 = sadd.s32 1, %s2157_s30  }
 0x11f   : >> { %p510_p4 = scmp.ge.s32.totalorder %s513_s30, 128  }
 0x120   : > { %s2159_s16 = smov (%p510_p4), 0  }
 0x121   : > { %512 = sbr.rel (!%p510_p4) target bundleno = 256 (0x100), region = 149 }
 0x126 LB: >> { %2093 = dma.done.wait [#allocation5], 16  ;;  %s2161_s16 = sphi %s2159_s16, %s536_s16  }
 0x127   : >> { %2094 = vsyncadd [#allocation5], 4294967280  ;;  %s536_s16 = sadd.s32 1, %s2161_s16  }
 0x128   : >> { %p533_p2 = scmp.ge.s32.totalorder %s536_s16, 128  }
 0x129   : > { %v554_v1 = vld [vmem:[#allocation4 + $0x78] sm:$0xff] (%p533_p2)  ;;  %s3009_s17 = sld [smem:[#allocation57_spill]] (%p533_p2)  ;;  %v553_v5 = vld [vmem:[#allocation4 + $0x70] sm:$0xff] (%p533_p2)  ;;  %v552_v8 = vld [vmem:[#allocation4 + $0x68] sm:$0xff] (%p533_p2) }
 0x12a   : > { %535 = sbr.rel (!%p533_p2) target bundleno = 294 (0x126), region = 160  ;;  %v570_v2 = vld [vmem:[%s2576_s7 + $0x78] sm:$0xff] (%p533_p2)  ;;  %v569_v6 = vld [vmem:[%s2576_s7 + $0x70] sm:$0xff] (%p533_p2)  ;;  %v568_v9 = vld [vmem:[%s2576_s7 + $0x68] sm:$0xff] (%p533_p2) }
 0x12b   : > { %v586_v3 = vadd.f32 (%p533_p2), %v570_v2, %v554_v1  ;;  %v585_v7 = vadd.f32 (%p533_p2), %v569_v6, %v553_v5  ;;  %v551_v10 = vld [vmem:[#allocation4 + $0x60] sm:$0xff] (%p533_p2)  ;;  %v584_v12 = vadd.f32 (%p533_p2), %v568_v9, %v552_v8  ;;  %v550_v14 = vld [vmem:[#allocation4 + $0x58] sm:$0xff] (%p533_p2)  ;;  %v549_v19 = vld [vmem:[#allocation4 + $0x50] sm:$0xff] (%p533_p2) }
 0x12c   : > { %v567_v13 = vld [vmem:[%s2576_s7 + $0x60] sm:$0xff] (%p533_p2)  ;;  %v566_v15 = vld [vmem:[%s2576_s7 + $0x58] sm:$0xff] (%p533_p2)  ;;  %v565_v20 = vld [vmem:[%s2576_s7 + $0x50] sm:$0xff] (%p533_p2) }
 0x12d   : > { %v602_v11 = vmax.f32 (%p533_p2), %v586_v3, 0.0  ;;  %v601_v16 = vmax.f32 (%p533_p2), %v585_v7, 0.0  ;;  %v583_v17 = vadd.f32 (%p533_p2), %v567_v13, %v551_v10  ;;  %v582_v18 = vadd.f32 (%p533_p2), %v566_v15, %v550_v14  ;;  %v548_v21 = vld [vmem:[#allocation4 + $0x48] sm:$0xff] (%p533_p2)  ;;  %v547_v26 = vld [vmem:[#allocation4 + $0x40] sm:$0xff] (%p533_p2)  ;;  %v546_v40 = vld [vmem:[#allocation4 + $0x38] sm:$0xff] (%p533_p2) }
 0x12e   : > { %v600_v23 = vmax.f32 (%p533_p2), %v584_v12, 0.0  ;;  %v581_v24 = vadd.f32 (%p533_p2), %v565_v20, %v549_v19  ;;  %v564_v25 = vld [vmem:[%s2576_s7 + $0x48] sm:$0xff] (%p533_p2)  ;;  %v563_v27 = vld [vmem:[%s2576_s7 + $0x40] sm:$0xff] (%p533_p2)  ;;  %v562_v45 = vld [vmem:[%s2576_s7 + $0x38] sm:$0xff] (%p533_p2) }
 0x12f   : > { %v2626_v4 = vld [vmem:[%s3009_s17] ss:$0 sm:$0xff]  ;;  %v2633_v22 = vadd.f32 1e-07, %v602_v11  ;;  %v2637_v28 = vadd.f32 1e-07, %v601_v16  ;;  %v580_v31 = vadd.f32 %v564_v25, %v548_v21  ;;  %v579_v35 = vadd.f32 %v563_v27, %v547_v26 }
 0x130   : > { %v599_v29 = vmax.f32 %v583_v17, 0.0  ;;  %v598_v30 = vmax.f32 %v582_v18, 0.0  ;;  %v2641_v33 = vadd.f32 1e-07, %v600_v23  ;;  %v597_v34 = vmax.f32 %v581_v24, 0.0  ;;  %v545_v50 = vld [vmem:[#allocation4 + $0x30] sm:$0xff] }
 0x131   : > { %v638_v32 = vsub.f32 %v2633_v22, %v2626_v4  ;;  %v637_v36 = vsub.f32 %v2637_v28, %v2626_v4  ;;  %v596_v39 = vmax.f32 %v580_v31, 0.0  ;;  %v595_v44 = vmax.f32 %v579_v35, 0.0  ;;  %v561_v51 = vld [vmem:[%s2576_s7 + $0x30] sm:$0xff]  ;;  %v544_v55 = vld [vmem:[#allocation4 + $0x28] sm:$0xff]  ;;  %v543_v60 = vld [vmem:[#allocation4 + $0x20] sm:$0xff] }
 0x132   : > { %v2645_v37 = vadd.f32 1e-07, %v599_v29  ;;  %v2647_v38 = vadd.f32 1e-07, %v598_v30  ;;  %v636_v42 = vsub.f32 %v2641_v33, %v2626_v4  ;;  %v2651_v43 = vadd.f32 1e-07, %v597_v34 }
 0x133   : > { %v669_v41 = vmul.f32 1.442695, %v638_v32  ;;  %v667_v46 = vmul.f32 1.442695, %v637_v36  ;;  %v2658_v49 = vadd.f32 1e-07, %v596_v39  ;;  %v578_v0 = vadd.f32 %v562_v45, %v546_v40 }
 0x134   : > { %v635_v47 = vsub.f32 %v2645_v37, %v2626_v4  ;;  %v634_v48 = vsub.f32 %v2647_v38, %v2626_v4  ;;  %v665_v52 = vmul.f32 1.442695, %v636_v42  ;;  %v633_v53 = vsub.f32 %v2651_v43, %v2626_v4  ;;  %v560_v56 = vld [vmem:[%s2576_s7 + $0x28] sm:$0xff]  ;;  %v559_v61 = vld [vmem:[%s2576_s7 + $0x20] sm:$0xff]  ;;  %v542_v1 = vld [vmem:[#allocation4 + $0x18] sm:$0xff] }
 0x135   : > { %1738 = vpow2.f32 %v669_v41  ;;  %v2663_v54 = vadd.f32 1e-07, %v595_v44  ;;  %v632_v59 = vsub.f32 %v2658_v49, %v2626_v4  ;;  %v558_v2 = vld [vmem:[%s2576_s7 + $0x18] sm:$0xff]  ;;  %v577_v5 = vadd.f32 %v561_v51, %v545_v50  ;;  %v541_v7 = vld [vmem:[#allocation4 + $0x10] sm:$0xff]  ;;  %v540_v40 = vld [vmem:[#allocation4 + $0x8] sm:$0xff] }
 0x136   : > { %1740 = vpow2.f32 %v667_v46  ;;  %v663_v57 = vmul.f32 1.442695, %v635_v47  ;;  %v661_v58 = vmul.f32 1.442695, %v634_v48  ;;  %v659_v62 = vmul.f32 1.442695, %v633_v53 }
 0x137   : > { %1742 = vpow2.f32 %v665_v52  ;;  %v631_v63 = vsub.f32 %v2663_v54, %v2626_v4  ;;  %v657_v3 = vmul.f32 1.442695, %v632_v59  ;;  %v576_v6 = vadd.f32 %v560_v56, %v544_v55  ;;  %v557_v8 = vld [vmem:[%s2576_s7 + $0x10] sm:$0xff]  ;;  %v539_v45 = vld [vmem:[#allocation4] sm:$0xff] }
 0x138   : > { %1744 = vpow2.f32 %v663_v57  ;;  %v594_v9 = vmax.f32 %v578_v0, 0.0  ;;  %v575_v10 = vadd.f32 %v559_v61, %v543_v60  ;;  %v593_v12 = vmax.f32 %v577_v5, 0.0  ;;  %v555_v46 = vld [vmem:[%s2576_s7] sm:$0xff] }
 0x139   : > { %1746 = vpow2.f32 %v661_v58  ;;  %v655_v11 = vmul.f32 1.442695, %v631_v63  ;;  %v592_v13 = vmax.f32 %v576_v6, 0.0  ;;  %v574_v14 = vadd.f32 %v558_v2, %v542_v1 }
 0x13a   : > { %1748 = vpow2.f32 %v659_v62  ;;  %v2673_v16 = vadd.f32 1e-07, %v594_v9  ;;  %v591_v17 = vmax.f32 %v575_v10, 0.0  ;;  %v573_v18 = vadd.f32 %v557_v8, %v541_v7 }
 0x13b   : > { %v1739_v15 = vpop.eup %1738  ;;  %1750 = vpow2.f32 %v657_v3  ;;  %v2676_v21 = vadd.f32 1e-07, %v593_v12  ;;  %v2678_v23 = vadd.f32 1e-07, %v592_v13  ;;  %v590_v29 = vmax.f32 %v574_v14, 0.0 }
 0x13c   : > { %v1741_v19 = vpop.eup %1740  ;;  %v787_v20 = vmul.f32 %v1739_v15, %v2633_v22  ;;  %1484 = vmatpush.msra.mxu3 %v1739_v15  ;;  %901 = vmatpush.msra.mxu1 %v1739_v15  ;;  %v630_v26 = vsub.f32 %v2673_v16, %v2626_v4  ;;  %v2683_v27 = vadd.f32 1e-07, %v591_v17  ;;  %v589_v34 = vmax.f32 %v573_v18, 0.0 }
 0x13d   : > { %v1743_v24 = vpop.eup %1742  ;;  %v786_v25 = vmul.f32 %v1741_v19, %v2637_v28  ;;  %v629_v31 = vsub.f32 %v2676_v21, %v2626_v4  ;;  %v628_v32 = vsub.f32 %v2678_v23, %v2626_v4  ;;  %1752 = vpow2.f32 %v655_v11 }
 0x13e   : > { %v1745_v30 = vpop.eup %1744  ;;  %1468 = vmatpush.msra.mxu2 %v787_v20  ;;  %1485 = vmatpush.msra.mxu3 %v1741_v19  ;;  %v785_v22 = vmul.f32 %v1743_v24, %v2641_v33  ;;  %v653_v35 = vmul.f32 1.442695, %v630_v26  ;;  %v627_v36 = vsub.f32 %v2683_v27, %v2626_v4  ;;  %v2692_v39 = vadd.f32 1e-07, %v590_v29  ;;  %v556_v33 = vld [vmem:[%s2576_s7 + $0x8] sm:$0xff]  ;;  %s3010_s7 = sld [smem:[#allocation42_spill]] }
 0x13f   : > { %v1747_v28 = vpop.eup %1746  ;;  %788 = vmatpush.msra.mxu0 %v787_v20  ;;  %902 = vmatpush.msra.mxu1 %v1741_v19  ;;  %v784_v41 = vmul.f32 %v1745_v30, %v2645_v37  ;;  %v651_v42 = vmul.f32 1.442695, %v629_v31  ;;  %v2696_v44 = vadd.f32 1e-07, %v589_v34  ;;  %v649_v48 = vmul.f32 1.442695, %v628_v32 }
 0x140   : > { %1469 = vmatpush.msra.mxu2 %v786_v25  ;;  %1486 = vmatpush.msra.mxu3 %v1743_v24  ;;  %v1749_v47 = vpop.eup %1748  ;;  %1754 = vpow2.f32 %v653_v35  ;;  %v626_v50 = vsub.f32 %v2692_v39, %v2626_v4  ;;  %v783_v52 = vmul.f32 %v1747_v28, %v2647_v38  ;;  %v572_v53 = vadd.f32 %v556_v33, %v540_v40 }
 0x141   : > { %789 = vmatpush.msra.mxu0 %v786_v25  ;;  %903 = vmatpush.msra.mxu1 %v1743_v24  ;;  %v1751_v51 = vpop.eup %1750  ;;  %1756 = vpow2.f32 %v651_v42  ;;  %v647_v37 = vmul.f32 1.442695, %v627_v36  ;;  %v625_v55 = vsub.f32 %v2696_v44, %v2626_v4  ;;  %v571_v56 = vadd.f32 %v555_v46, %v539_v45 }
 0x142   : > { %1470 = vmatpush.msra.mxu2 %v785_v22  ;;  %1487 = vmatpush.msra.mxu3 %v1745_v30  ;;  %v782_v57 = vmul.f32 %v1749_v47, %v2651_v43  ;;  %v588_v58 = vmax.f32 %v572_v53, 0.0  ;;  %1758 = vpow2.f32 %v649_v48  ;;  %v645_v60 = vmul.f32 1.442695, %v626_v50 }
 0x143   : > { %790 = vmatpush.msra.mxu0 %v785_v22  ;;  %904 = vmatpush.msra.mxu1 %v1745_v30  ;;  %v1753_v59 = vpop.eup %1752  ;;  %v587_v38 = vmax.f32 %v571_v56, 0.0  ;;  %v781_v61 = vmul.f32 %v1751_v51, %v2658_v49  ;;  %1760 = vpow2.f32 %v647_v37  ;;  %v643_v0 = vmul.f32 1.442695, %v625_v55 }
 0x144   : > { %1471 = vmatpush.msra.mxu2 %v784_v41  ;;  %1488 = vmatpush.msra.mxu3 %v1747_v28  ;;  %v2706_v62 = vadd.f32 1e-07, %v588_v58  ;;  %v780_v43 = vmul.f32 %v1753_v59, %v2663_v54  ;;  %v671_v3 = vlaneseq  ;;  %1762 = vpow2.f32 %v645_v60  ;;  %s1409_s3 = sshll.u32 %s3010_s7, 7  ;;  %v885_v60 = vld [vmem:[#allocation3 + $0x28] sm:$0xff] }
 0x145   : > { %791 = vmatpush.msra.mxu0 %v784_v41  ;;  %905 = vmatpush.msra.mxu1 %v1747_v28  ;;  %v2708_v1 = vadd.f32 1e-07, %v587_v38  ;;  %1764 = vpow2.f32 %v643_v0  ;;  %v2171_v29 = vmov 1.0   ;;  %v893_v0 = vld [vmem:[#allocation3 + $0x20] sm:$0xff] }
 0x146   : > { %1472 = vmatpush.msra.mxu2 %v783_v52  ;;  %1489 = vmatpush.msra.mxu3 %v1749_v47  ;;  %v1755_v63 = vpop.eup %1754  ;;  %v624_v2 = vsub.f32 %v2706_v62, %v2626_v4  ;;  %v2717_v10 = vshrl.u32 %v671_v3, 7 }
 0x147   : > { %792 = vmatpush.msra.mxu0 %v783_v52  ;;  %906 = vmatpush.msra.mxu1 %v1749_v47  ;;  %v1757_v5 = vpop.eup %1756  ;;  %v623_v49 = vsub.f32 %v2708_v1, %v2626_v4  ;;  %v779_v6 = vmul.f32 %v1755_v63, %v2673_v16  ;;  %v2723_v16 = vstv %s1409_s3 }
 0x148   : > { %1473 = vmatpush.msra.mxu2 %v782_v57  ;;  %1490 = vmatpush.msra.mxu3 %v1751_v51  ;;  %v641_v7 = vmul.f32 1.442695, %v624_v2  ;;  %v1759_v8 = vpop.eup %1758  ;;  %v778_v9 = vmul.f32 %v1757_v5, %v2676_v21  ;;  %v680_v14 = vadd.s32 64, %v2717_v10  ;;  %v2729_v21 = vld [vmem:[%s2583_s22] ss:$0 sm:$0xff]  ;;  %v690_v25 = vadd.s32 %v2723_v16, %v2717_v10 }
 0x149   : > { %793 = vmatpush.msra.mxu0 %v782_v57  ;;  %907 = vmatpush.msra.mxu1 %v1751_v51  ;;  %v639_v54 = vmul.f32 1.442695, %v623_v49  ;;  %v1761_v11 = vpop.eup %1760  ;;  %v777_v4 = vmul.f32 %v1759_v8, %v2678_v23  ;;  %v673_v30 = vadd.s32 8, %v2717_v10  ;;  %v682_v32 = vadd.s32 80, %v2717_v10  ;;  %v757_v49 = vld [vmem:[#allocation2] sm:$0xff] }
 0x14a   : > { %1474 = vmatpush.msra.mxu2 %v781_v61  ;;  %1491 = vmatpush.msra.mxu3 %v1753_v59  ;;  %1766 = vpow2.f32 %v641_v7  ;;  %v1763_v12 = vpop.eup %1762  ;;  %v776_v13 = vmul.f32 %v1761_v11, %v2683_v27  ;;  %v698_v20 = vadd.s32 %v2723_v16, %v680_v14  ;;  %v681_v27 = vadd.s32 72, %v2717_v10 }
 0x14b   : > { %794 = vmatpush.msra.mxu0 %v781_v61  ;;  %908 = vmatpush.msra.mxu1 %v1753_v59  ;;  %1768 = vpow2.f32 %v639_v54  ;;  %v1765_v15 = vpop.eup %1764  ;;  %v775_v17 = vmul.f32 %v1763_v12, %v2692_v39  ;;  %vm708_vm1 = vcmp.eq.s32.totalorder %v690_v25, %v2729_v21  ;;  %v691_v31 = vadd.s32 %v2723_v16, %v673_v30  ;;  %v756_v59 = vld [vmem:[#allocation2 + $0x30] sm:$0xff]  ;;  %v888_v30 = vld [vmem:[#allocation3 + $0x40] sm:$0xff] }
 0x14c   : > { %1475 = vmatpush.msra.mxu2 %v780_v43  ;;  %1492 = vmatpush.msra.mxu3 %v1755_v63  ;;  %v774_v19 = vmul.f32 %v1765_v15, %v2696_v44  ;;  %vm716_vm0 = vcmp.eq.s32.totalorder %v698_v20, %v2729_v21  ;;  %v699_v22 = vadd.s32 %v2723_v16, %v681_v27  ;;  %v674_v34 = vadd.s32 16, %v2717_v10 }
 0x14d   : > { %795 = vmatpush.msra.mxu0 %v780_v43  ;;  %909 = vmatpush.msra.mxu1 %v1755_v63  ;;  %vm709_vm3 = vcmp.eq.s32.totalorder %v691_v31, %v2729_v21  ;;  %v700_v28 = vadd.s32 %v2723_v16, %v682_v32  ;;  %v683_v36 = vadd.s32 88, %v2717_v10  ;;  %v675_v39 = vadd.s32 24, %v2717_v10 }
 0x14e   : > { %1476 = vmatpush.msra.mxu2 %v779_v6  ;;  %1493 = vmatpush.msra.mxu3 %v1757_v5  ;;  %vm717_vm2 = vcmp.eq.s32.totalorder %v699_v22, %v2729_v21  ;;  %v692_v35 = vadd.s32 %v2723_v16, %v674_v34  ;;  %v684_v41 = vadd.s32 96, %v2717_v10  ;;  %v676_v42 = vadd.s32 32, %v2717_v10 }
 0x14f   : > { %796 = vmatpush.msra.mxu0 %v779_v6  ;;  %910 = vmatpush.msra.mxu1 %v1757_v5  ;;  %vm718_vm4 = vcmp.eq.s32.totalorder %v700_v28, %v2729_v21  ;;  %v701_v40 = vadd.s32 %v2723_v16, %v683_v36  ;;  %v693_v33 = vadd.s32 %v2723_v16, %v675_v39  ;;  %v685_v46 = vadd.s32 104, %v2717_v10  ;;  %v886_v6 = vld [vmem:[#allocation3 + $0x68] sm:$0xff]  ;;  %v896_v28 = vld [vmem:[#allocation3 + $0x58] sm:$0xff] }
 0x150   : > { %1477 = vmatpush.msra.mxu2 %v778_v9  ;;  %1494 = vmatpush.msra.mxu3 %v1759_v8  ;;  %v1767_v18 = vpop.eup %1766  ;;  %vm710_vm5 = vcmp.eq.s32.totalorder %v692_v35, %v2729_v21  ;;  %v702_v44 = vadd.s32 %v2723_v16, %v684_v41  ;;  %v694_v45 = vadd.s32 %v2723_v16, %v676_v42  ;;  %v677_v47 = vadd.s32 40, %v2717_v10  ;;  %v767_v35 = vld [vmem:[#allocation2 + $0x38] sm:$0xff]  ;;  %v760_v41 = vld [vmem:[#allocation2 + $0x50] sm:$0xff]  ;;  %v889_v42 = vld [vmem:[#allocation3 + $0x48] sm:$0xff] }
 0x151   : > { %797 = vmatpush.msra.mxu0 %v778_v9  ;;  %911 = vmatpush.msra.mxu1 %v1759_v8  ;;  %v1769_v23 = vpop.eup %1768  ;;  %v773_v24 = vmul.f32 %v1767_v18, %v2706_v62  ;;  %vm719_vm6 = vcmp.eq.s32.totalorder %v701_v40, %v2729_v21  ;;  %vm711_vm7 = vcmp.eq.s32.totalorder %v693_v33, %v2729_v21  ;;  %v686_v51 = vadd.s32 112, %v2717_v10 }
 0x152   : > { %1478 = vmatpush.msra.mxu2 %v777_v4  ;;  %1495 = vmatpush.msra.mxu3 %v1761_v11  ;;  %v772_v26 = vmul.f32 %v1769_v23, %v2708_v1  ;;  %vm720_vm8 = vcmp.eq.s32.totalorder %v702_v44, %v2729_v21  ;;  %vm712_vm9 = vcmp.eq.s32.totalorder %v694_v45, %v2729_v21  ;;  %v678_v52 = vadd.s32 48, %v2717_v10  ;;  %v764_v1 = vld [vmem:[#allocation2 + $0x40] sm:$0xff] }
 0x153   : > { %798 = vmatpush.msra.mxu0 %v777_v4  ;;  %912 = vmatpush.msra.mxu1 %v1761_v11  ;;  %v703_v48 = vadd.s32 %v2723_v16, %v685_v46  ;;  %v695_v50 = vadd.s32 %v2723_v16, %v677_v47  ;;  %v704_v53 = vadd.s32 %v2723_v16, %v686_v51  ;;  %v687_v55 = vadd.s32 120, %v2717_v10  ;;  %v765_v11 = vld [vmem:[#allocation2 + $0x20] sm:$0xff] }
 0x154   : > { %1479 = vmatpush.msra.mxu2 %v776_v13  ;;  %1496 = vmatpush.msra.mxu3 %v1763_v12  ;;  %v696_v37 = vadd.s32 %v2723_v16, %v678_v52  ;;  %v679_v56 = vadd.s32 56, %v2717_v10  ;;  %v894_v10 = vld [vmem:[#allocation3 + $0x78] sm:$0xff] }
 0x155   : > { %799 = vmatpush.msra.mxu0 %v776_v13  ;;  %913 = vmatpush.msra.mxu1 %v1763_v12  ;;  %vm721_vm10 = vcmp.eq.s32.totalorder %v703_v48, %v2729_v21  ;;  %vm713_vm11 = vcmp.eq.s32.totalorder %v695_v50, %v2729_v21  ;;  %vm722_vm12 = vcmp.eq.s32.totalorder %v704_v53, %v2729_v21  ;;  %v897_v48 = vld [vmem:[#allocation3] sm:$0xff] }
 0x156   : > { %1480 = vmatpush.msra.mxu2 %v775_v17  ;;  %1497 = vmatpush.msra.mxu3 %v1765_v15  ;;  %vm714_vm13 = vcmp.eq.s32.totalorder %v696_v37, %v2729_v21  ;;  %v705_v57 = vadd.s32 %v2723_v16, %v687_v55  ;;  %v697_v58 = vadd.s32 %v2723_v16, %v679_v56  ;;  %v887_v16 = vld [vmem:[#allocation3 + $0x10] sm:$0xff]  ;;  %v768_v50 = vld [vmem:[#allocation2 + $0x60] sm:$0xff]  ;;  %v761_v55 = vld [vmem:[#allocation2 + $0x68] sm:$0xff] }
 0x157   : > { %800 = vmatpush.msra.mxu0 %v775_v17  ;;  %914 = vmatpush.msra.mxu1 %v1765_v15  ;;  %v758_v15 = vld [vmem:[#allocation2 + $0x58] sm:$0xff]  ;;  %v890_v56 = vld [vmem:[#allocation3 + $0x30] sm:$0xff] }
 0x158   : > { %1481 = vmatpush.msra.mxu2 %v774_v19  ;;  %1498 = vmatpush.msra.mxu3 %v1767_v18  ;;  %vm723_vm14 = vcmp.eq.s32.totalorder %v705_v57, %v2729_v21  ;;  %vm715_vm15 = vcmp.eq.s32.totalorder %v697_v58, %v2729_v21  ;;  %v895_v21 = vld [vmem:[#allocation3 + $0x18] sm:$0xff] }
 0x159   : > { %801 = vmatpush.msra.mxu0 %v774_v19  ;;  %915 = vmatpush.msra.mxu1 %v1767_v18 }
 0x15a   : > { %1482 = vmatpush.msra.mxu2 %v773_v24  ;;  %1499 = vmatpush.msra.mxu3 %v1769_v23 }
 0x15b   : > { %1450 = vmatmul.msk.f32.vlgmr.msra.gmra.mxu3 %vm716_vm0, %v2171_v29  ;;  %802 = vmatpush.msra.mxu0 %v773_v24 }
 0x15c   : > { %1483 = vmatpush.msra.mxu2 %v772_v26  ;;  %916 = vmatpush.msra.mxu1 %v1769_v23  ;;  %v766_v23 = vld [vmem:[#allocation2 + $0x10] sm:$0xff] }
 0x15d   : > { %1434 = vmatmul.msk.f32.vlgmr.msra.gmra.mxu2 %vm716_vm0, %v2171_v29  ;;  %803 = vmatpush.msra.mxu0 %v772_v26 }
 0x15e   : > { %1426 = vmatmul.msk.f32.vlgmr.msra.gmra.mxu0 %vm708_vm1, %v2171_v29  ;;  %1442 = vmatmul.msk.f32.vlgmr.msra.gmra.mxu1 %vm708_vm1, %v2171_v29 }
 0x163   : > { %1451 = vmatmul.msk.f32.gmra.mxu3 %vm717_vm2, %v2171_v29 }
 0x165   : > { %1435 = vmatmul.msk.f32.gmra.mxu2 %vm717_vm2, %v2171_v29 }
 0x166   : > { %1427 = vmatmul.msk.f32.gmra.mxu0 %vm709_vm3, %v2171_v29  ;;  %1443 = vmatmul.msk.f32.gmra.mxu1 %vm709_vm3, %v2171_v29 }
 0x16b   : > { %1452 = vmatmul.msk.f32.gmra.mxu3 %vm718_vm4, %v2171_v29 }
 0x16d   : > { %1436 = vmatmul.msk.f32.gmra.mxu2 %vm718_vm4, %v2171_v29 }
 0x16e   : > { %1428 = vmatmul.msk.f32.gmra.mxu0 %vm710_vm5, %v2171_v29  ;;  %1444 = vmatmul.msk.f32.gmra.mxu1 %vm710_vm5, %v2171_v29 }
 0x173   : > { %1453 = vmatmul.msk.f32.gmra.mxu3 %vm719_vm6, %v2171_v29 }
 0x175   : > { %1437 = vmatmul.msk.f32.gmra.mxu2 %vm719_vm6, %v2171_v29 }
 0x176   : > { %1429 = vmatmul.msk.f32.gmra.mxu0 %vm711_vm7, %v2171_v29  ;;  %1445 = vmatmul.msk.f32.gmra.mxu1 %vm711_vm7, %v2171_v29 }
 0x17b   : > { %1454 = vmatmul.msk.f32.gmra.mxu3 %vm720_vm8, %v2171_v29 }
 0x17d   : > { %1438 = vmatmul.msk.f32.gmra.mxu2 %vm720_vm8, %v2171_v29 }
 0x17e   : > { %1430 = vmatmul.msk.f32.gmra.mxu0 %vm712_vm9, %v2171_v29  ;;  %1446 = vmatmul.msk.f32.gmra.mxu1 %vm712_vm9, %v2171_v29 }
 0x183   : > { %1455 = vmatmul.msk.f32.gmra.mxu3 %vm721_vm10, %v2171_v29 }
 0x185   : > { %1439 = vmatmul.msk.f32.gmra.mxu2 %vm721_vm10, %v2171_v29 }
 0x186   : > { %1431 = vmatmul.msk.f32.gmra.mxu0 %vm713_vm11, %v2171_v29  ;;  %1447 = vmatmul.msk.f32.gmra.mxu1 %vm713_vm11, %v2171_v29 }
 0x18b   : > { %1456 = vmatmul.msk.f32.gmra.mxu3 %vm722_vm12, %v2171_v29 }
 0x18d   : > { %1440 = vmatmul.msk.f32.gmra.mxu2 %vm722_vm12, %v2171_v29 }
 0x18e   : > { %1432 = vmatmul.msk.f32.gmra.mxu0 %vm714_vm13, %v2171_v29  ;;  %1448 = vmatmul.msk.f32.gmra.mxu1 %vm714_vm13, %v2171_v29 }
 0x193   : > { %1457 = vmatmul.msk.f32.gmra.mxu3 %vm723_vm14, %v2171_v29 }
 0x195   : > { %1441 = vmatmul.msk.f32.gmra.mxu2 %vm723_vm14, %v2171_v29 }
 0x196   : > { %1433 = vmatmul.msk.f32.gmra.mxu0 %vm715_vm15, %v2171_v29  ;;  %1449 = vmatmul.msk.f32.gmra.mxu1 %vm715_vm15, %v2171_v29  ;;  %v759_v29 = vld [vmem:[#allocation2 + $0x18] sm:$0xff] }
 0x1db   : > { %v805_v38 = vpop.f32.mrf.mxu0  ;;  %v918_v61 = vpop.f32.mrf.mxu1 }
 0x1dc   : > { %v853_v62 = vadd.f32 %v805_v38, %v756_v59  ;;  %v966_v63 = vadd.f32 %v918_v61, %v885_v60  ;;  %v898_v38 = vld [vmem:[#allocation3 + $0x8] sm:$0xff]  ;;  %v769_v61 = vld [vmem:[#allocation2 + $0x70] sm:$0xff] }
 0x1de   : > { %869 = vst [vmem:[#allocation2 + $0x30] sm:$0xff] %v853_v62  ;;  %v942_v43 = vpop.f32.mrf.mxu3 }
 0x1df   : > { %982 = vst [vmem:[#allocation3 + $0x28] sm:$0xff] %v966_v63  ;;  %v974_v2 = vadd.f32 %v942_v43, %v893_v0  ;;  %v762_v43 = vld [vmem:[#allocation2 + $0x8] sm:$0xff] }
 0x1e0   : > { %v829_v3 = vpop.f32.mrf.mxu2 }
 0x1e1   : > { %v861_v5 = vadd.f32 %v829_v3, %v764_v1  ;;  %990 = vst [vmem:[#allocation3 + $0x20] sm:$0xff] %v974_v2  ;;  %v891_v2 = vld [vmem:[#allocation3 + $0x70] sm:$0xff] }
 0x1e3   : > { %877 = vst [vmem:[#allocation2 + $0x40] sm:$0xff] %v861_v5  ;;  %v808_v7 = vpop.f32.mrf.mxu0  ;;  %v921_v8 = vpop.f32.mrf.mxu1 }
 0x1e4   : > { %v854_v54 = vadd.f32 %v808_v7, %v757_v49  ;;  %v967_v9 = vadd.f32 %v921_v8, %v886_v6  ;;  %v899_v7 = vld [vmem:[#allocation3 + $0x60] sm:$0xff]  ;;  %v770_v8 = vld [vmem:[#allocation2 + $0x78] sm:$0xff] }
 0x1e6   : > { %870 = vst [vmem:[#allocation2] sm:$0xff] %v854_v54  ;;  %v945_v4 = vpop.f32.mrf.mxu3 }
 0x1e7   : > { %983 = vst [vmem:[#allocation3 + $0x68] sm:$0xff] %v967_v9  ;;  %v975_v12 = vadd.f32 %v945_v4, %v894_v10  ;;  %v763_v4 = vld [vmem:[#allocation2 + $0x48] sm:$0xff] }
 0x1e8   : > { %v832_v13 = vpop.f32.mrf.mxu2 }
 0x1e9   : > { %v862_v14 = vadd.f32 %v832_v13, %v765_v11  ;;  %991 = vst [vmem:[#allocation3 + $0x78] sm:$0xff] %v975_v12  ;;  %v892_v12 = vld [vmem:[#allocation3 + $0x38] sm:$0xff] }
 0x1eb   : > { %878 = vst [vmem:[#allocation2 + $0x20] sm:$0xff] %v862_v14  ;;  %v811_v17 = vpop.f32.mrf.mxu0  ;;  %v924_v18 = vpop.f32.mrf.mxu1 }
 0x1ec   : > { %v855_v19 = vadd.f32 %v811_v17, %v758_v15  ;;  %v968_v20 = vadd.f32 %v924_v18, %v887_v16  ;;  %v900_v17 = vld [vmem:[#allocation3 + $0x50] sm:$0xff]  ;;  %v771_v18 = vld [vmem:[#allocation2 + $0x28] sm:$0xff] }
 0x1ee   : > { %871 = vst [vmem:[#allocation2 + $0x58] sm:$0xff] %v855_v19  ;;  %v948_v24 = vpop.f32.mrf.mxu3 }
 0x1ef   : > { %984 = vst [vmem:[#allocation3 + $0x10] sm:$0xff] %v968_v20  ;;  %v976_v25 = vadd.f32 %v948_v24, %v895_v21 }
 0x1f0   : > { %v835_v26 = vpop.f32.mrf.mxu2 }
 0x1f1   : > { %v863_v27 = vadd.f32 %v835_v26, %v766_v23  ;;  %992 = vst [vmem:[#allocation3 + $0x18] sm:$0xff] %v976_v25 }
 0x1f3   : > { %879 = vst [vmem:[#allocation2 + $0x10] sm:$0xff] %v863_v27  ;;  %v814_v22 = vpop.f32.mrf.mxu0  ;;  %v927_v31 = vpop.f32.mrf.mxu1 }
 0x1f4   : > { %v856_v32 = vadd.f32 %v814_v22, %v759_v29  ;;  %v969_v34 = vadd.f32 %v927_v31, %v888_v30 }
 0x1f6   : > { %872 = vst [vmem:[#allocation2 + $0x18] sm:$0xff] %v856_v32  ;;  %v951_v36 = vpop.f32.mrf.mxu3 }
 0x1f7   : > { %985 = vst [vmem:[#allocation3 + $0x40] sm:$0xff] %v969_v34  ;;  %v977_v39 = vadd.f32 %v951_v36, %v896_v28 }
 0x1f8   : > { %v838_v40 = vpop.f32.mrf.mxu2 }
 0x1f9   : > { %v864_v33 = vadd.f32 %v838_v40, %v767_v35  ;;  %993 = vst [vmem:[#allocation3 + $0x58] sm:$0xff] %v977_v39 }
 0x1fb   : > { %880 = vst [vmem:[#allocation2 + $0x38] sm:$0xff] %v864_v33  ;;  %v817_v44 = vpop.f32.mrf.mxu0  ;;  %v930_v45 = vpop.f32.mrf.mxu1 }
 0x1fc   : > { %v857_v46 = vadd.f32 %v817_v44, %v760_v41  ;;  %v970_v47 = vadd.f32 %v930_v45, %v889_v42 }
 0x1fe   : > { %873 = vst [vmem:[#allocation2 + $0x50] sm:$0xff] %v857_v46  ;;  %v954_v51 = vpop.f32.mrf.mxu3 }
 0x1ff   : > { %986 = vst [vmem:[#allocation3 + $0x48] sm:$0xff] %v970_v47  ;;  %v978_v52 = vadd.f32 %v954_v51, %v897_v48 }
 0x200   : > { %v841_v53 = vpop.f32.mrf.mxu2 }
 0x201   : > { %v865_v37 = vadd.f32 %v841_v53, %v768_v50  ;;  %994 = vst [vmem:[#allocation3] sm:$0xff] %v978_v52 }
 0x203   : > { %881 = vst [vmem:[#allocation2 + $0x60] sm:$0xff] %v865_v37  ;;  %v820_v57 = vpop.f32.mrf.mxu0  ;;  %v933_v58 = vpop.f32.mrf.mxu1 }
 0x204   : > { %v858_v59 = vadd.f32 %v820_v57, %v761_v55  ;;  %v971_v60 = vadd.f32 %v933_v58, %v890_v56 }
 0x206   : > { %874 = vst [vmem:[#allocation2 + $0x68] sm:$0xff] %v858_v59  ;;  %v957_v62 = vpop.f32.mrf.mxu3 }
 0x207   : > { %987 = vst [vmem:[#allocation3 + $0x30] sm:$0xff] %v971_v60  ;;  %v979_v63 = vadd.f32 %v957_v62, %v898_v38 }
 0x208   : > { %v844_v0 = vpop.f32.mrf.mxu2 }
 0x209   : > { %v866_v1 = vadd.f32 %v844_v0, %v769_v61  ;;  %995 = vst [vmem:[#allocation3 + $0x8] sm:$0xff] %v979_v63 }
 0x20b   : > { %882 = vst [vmem:[#allocation2 + $0x70] sm:$0xff] %v866_v1  ;;  %v823_v3 = vpop.f32.mrf.mxu0  ;;  %v936_v5 = vpop.f32.mrf.mxu1 }
 0x20c   : > { %v859_v49 = vadd.f32 %v823_v3, %v762_v43  ;;  %v972_v6 = vadd.f32 %v936_v5, %v891_v2 }
 0x20e   : > { %875 = vst [vmem:[#allocation2 + $0x8] sm:$0xff] %v859_v49  ;;  %v960_v54 = vpop.f32.mrf.mxu3 }
 0x20f   : > { %988 = vst [vmem:[#allocation3 + $0x70] sm:$0xff] %v972_v6  ;;  %v980_v9 = vadd.f32 %v960_v54, %v899_v7 }
 0x210   : > { %v847_v10 = vpop.f32.mrf.mxu2 }
 0x211   : > { %v867_v11 = vadd.f32 %v847_v10, %v770_v8  ;;  %996 = vst [vmem:[#allocation3 + $0x60] sm:$0xff] %v980_v9 }
 0x213   : > { %883 = vst [vmem:[#allocation2 + $0x78] sm:$0xff] %v867_v11  ;;  %v826_v13 = vpop.f32.mrf.mxu0  ;;  %v939_v14 = vpop.f32.mrf.mxu1 }
 0x214   : > { %v860_v15 = vadd.f32 %v826_v13, %v763_v4  ;;  %v973_v16 = vadd.f32 %v939_v14, %v892_v12 }
 0x216   : > { %876 = vst [vmem:[#allocation2 + $0x48] sm:$0xff] %v860_v15  ;;  %v963_v19 = vpop.f32.mrf.mxu3 }
 0x217   : > { %989 = vst [vmem:[#allocation3 + $0x38] sm:$0xff] %v973_v16  ;;  %v981_v20 = vadd.f32 %v963_v19, %v900_v17 }
 0x218   : > { %v850_v21 = vpop.f32.mrf.mxu2 }
 0x219   : > { %v868_v23 = vadd.f32 %v850_v21, %v771_v18  ;;  %997 = vst [vmem:[#allocation3 + $0x50] sm:$0xff] %v981_v20 }
 0x21b   : > { %884 = vst [vmem:[#allocation2 + $0x28] sm:$0xff] %v868_v23 }
 0x21c PF: > { %s3011_s22 = sld [smem:[#allocation41_spill]] }
 0x222   : > { %p1458_p11 = scmp.ne.s32.totalorder %s3011_s22, 5 }
 0x223   : > { %s3012_s8 = sld [smem:[#allocation56_spill]] (!%p1458_p11) }
 0x224   : > { %1001 = sbr.rel (%p1458_p11) target bundleno = 745 (0x2e9), region = 90 }
 0x229   : > { %v1129_v24 = vld [vmem:[#allocation16 + $0x78] sm:$0xff]  ;;  %v1128_v25 = vld [vmem:[#allocation16 + $0x70] sm:$0xff]  ;;  %v1127_v26 = vld [vmem:[#allocation16 + $0x68] sm:$0xff] }
 0x22a   : > { %1501 = vmatpush.msra.mxu2 %v1129_v24  ;;  %1502 = vmatpush.msra.mxu3 %v1129_v24  ;;  %v1126_v27 = vld [vmem:[#allocation16 + $0x60] sm:$0xff]  ;;  %v1125_v29 = vld [vmem:[#allocation16 + $0x58] sm:$0xff]  ;;  %v1124_v22 = vld [vmem:[#allocation16 + $0x50] sm:$0xff] }
 0x22b   : > { %1134 = vmatpush.msra.mxu0 %v1129_v24  ;;  %1500 = vmatpush.msra.mxu1 %v1129_v24  ;;  %v1026_v30 = vld [vmem:[#allocation3 + $0x20] sm:$0xff]  ;;  %v1018_v32 = vld [vmem:[#allocation3 + $0x28] sm:$0xff]  ;;  %v1027_v42 = vld [vmem:[#allocation3 + $0x78] sm:$0xff] }
 0x22c   : > { %1504 = vmatpush.msra.mxu2 %v1128_v25  ;;  %1505 = vmatpush.msra.mxu3 %v1128_v25  ;;  %v1030_v31 = vld [vmem:[#allocation3] sm:$0xff]  ;;  %v1123_v34 = vld [vmem:[#allocation16 + $0x48] sm:$0xff]  ;;  %v1042_v28 = vadd.f32 1e-20, %v1026_v30  ;;  %v1034_v40 = vadd.f32 1e-20, %v1018_v32 }
 0x22d   : > { %1135 = vmatpush.msra.mxu0 %v1128_v25  ;;  %1503 = vmatpush.msra.mxu1 %v1128_v25  ;;  %v1022_v35 = vld [vmem:[#allocation3 + $0x48] sm:$0xff]  ;;  %v1046_v36 = vadd.f32 1e-20, %v1030_v31  ;;  %v1121_v41 = vld [vmem:[#allocation16 + $0x38] sm:$0xff]  ;;  %v1120_v44 = vld [vmem:[#allocation16 + $0x30] sm:$0xff] }
 0x22e   : > { %1507 = vmatpush.msra.mxu2 %v1127_v26  ;;  %1508 = vmatpush.msra.mxu3 %v1127_v26  ;;  %v1122_v39 = vld [vmem:[#allocation16 + $0x40] sm:$0xff]  ;;  %v1038_v33 = vadd.f32 1e-20, %v1022_v35  ;;  %1771 = vrcp.f32 %v1042_v28  ;;  %v1119_v47 = vld [vmem:[#allocation16 + $0x28] sm:$0xff]  ;;  %v1043_v48 = vadd.f32 1e-20, %v1027_v42 }
 0x22f   : > { %1136 = vmatpush.msra.mxu0 %v1127_v26  ;;  %1506 = vmatpush.msra.mxu1 %v1127_v26  ;;  %1773 = vrcp.f32 %v1046_v36  ;;  %v1031_v45 = vld [vmem:[#allocation3 + $0x8] sm:$0xff]  ;;  %v1023_v50 = vld [vmem:[#allocation3 + $0x30] sm:$0xff]  ;;  %v1010_v56 = vld [vmem:[#allocation2 + $0x40] sm:$0xff] }
 0x230   : > { %1510 = vmatpush.msra.mxu2 %v1126_v27  ;;  %1511 = vmatpush.msra.mxu3 %v1126_v27  ;;  %1775 = vrcp.f32 %v1034_v40  ;;  %v1019_v46 = vld [vmem:[#allocation3 + $0x68] sm:$0xff]  ;;  %v1047_v51 = vadd.f32 1e-20, %v1031_v45  ;;  %v1014_v57 = vld [vmem:[#allocation2 + $0x60] sm:$0xff]  ;;  %v1039_v58 = vadd.f32 1e-20, %v1023_v50 }
 0x231   : > { %1137 = vmatpush.msra.mxu0 %v1126_v27  ;;  %1509 = vmatpush.msra.mxu1 %v1126_v27  ;;  %1777 = vrcp.f32 %v1038_v33  ;;  %v1118_v53 = vld [vmem:[#allocation16 + $0x20] sm:$0xff]  ;;  %v1035_v37 = vadd.f32 1e-20, %v1019_v46  ;;  %v1117_v60 = vld [vmem:[#allocation16 + $0x18] sm:$0xff]  ;;  %v1002_v61 = vld [vmem:[#allocation2 + $0x30] sm:$0xff] }
 0x232   : > { %1513 = vmatpush.msra.mxu2 %v1125_v29  ;;  %1514 = vmatpush.msra.mxu3 %v1125_v29  ;;  %1779 = vrcp.f32 %v1043_v48  ;;  %v1006_v62 = vld [vmem:[#allocation2 + $0x50] sm:$0xff]  ;;  %v1028_v63 = vld [vmem:[#allocation3 + $0x18] sm:$0xff]  ;;  %v1032_v2 = vld [vmem:[#allocation3 + $0x60] sm:$0xff] }
 0x233   : > { %1138 = vmatpush.msra.mxu0 %v1125_v29  ;;  %1512 = vmatpush.msra.mxu1 %v1125_v29  ;;  %1781 = vrcp.f32 %v1047_v51  ;;  %v1116_v0 = vld [vmem:[#allocation16 + $0x10] sm:$0xff]  ;;  %v1090_v3 = vld [vmem:[%s2568_s24 + $0x40] sm:$0xff]  ;;  %v1115_v6 = vld [vmem:[#allocation16 + $0x8] sm:$0xff]  ;;  %v1044_v54 = vadd.f32 1e-20, %v1028_v63 }
 0x234   : > { %1516 = vmatpush.msra.mxu2 %v1124_v22  ;;  %1517 = vmatpush.msra.mxu3 %v1124_v22  ;;  %v1772_v52 = vpop.eup %1771  ;;  %1783 = vrcp.f32 %v1035_v37  ;;  %v1094_v5 = vld [vmem:[%s2568_s24 + $0x60] sm:$0xff]  ;;  %v1020_v49 = vld [vmem:[#allocation3 + $0x10] sm:$0xff]  ;;  %v1048_v4 = vadd.f32 1e-20, %v1032_v2  ;;  %v1007_v27 = vld [vmem:[#allocation2 + $0x68] sm:$0xff] }
 0x235   : > { %1139 = vmatpush.msra.mxu0 %v1124_v22  ;;  %1515 = vmatpush.msra.mxu1 %v1124_v22  ;;  %v1774_v55 = vpop.eup %1773  ;;  %v1074_v1 = vmul.f32 %v1772_v52, %v1010_v56  ;;  %1785 = vrcp.f32 %v1039_v58  ;;  %v1024_v9 = vld [vmem:[#allocation3 + $0x70] sm:$0xff]  ;;  %v1082_v10 = vld [vmem:[%s2568_s24] sm:$0xff]  ;;  %v1036_v16 = vadd.f32 1e-20, %v1020_v49  ;;  %v1029_v29 = vld [vmem:[#allocation3 + $0x58] sm:$0xff] }
 0x236   : > { %1519 = vmatpush.msra.mxu2 %v1123_v34  ;;  %1520 = vmatpush.msra.mxu3 %v1123_v34  ;;  %v1776_v59 = vpop.eup %1775  ;;  %v1078_v43 = vmul.f32 %v1774_v55, %v1014_v57  ;;  %v1086_v11 = vld [vmem:[%s2568_s24 + $0x20] sm:$0xff]  ;;  %v1015_v19 = vld [vmem:[#allocation2 + $0x70] sm:$0xff]  ;;  %v1040_v20 = vadd.f32 1e-20, %v1024_v9  ;;  %1787 = vrcp.f32 %v1044_v54  ;;  %v1091_v32 = vld [vmem:[%s2568_s24 + $0x48] sm:$0xff] }
 0x237   : > { %1140 = vmatpush.msra.mxu0 %v1123_v34  ;;  %1518 = vmatpush.msra.mxu1 %v1123_v34  ;;  %v1778_v38 = vpop.eup %1777  ;;  %v1066_v7 = vmul.f32 %v1776_v59, %v1002_v61  ;;  %v1114_v13 = vld [vmem:[#allocation16] sm:$0xff]  ;;  %v1106_v14 = vadd.f32 %v1090_v3, %v1074_v1  ;;  %1789 = vrcp.f32 %v1048_v4  ;;  %v1033_v31 = vld [vmem:[#allocation3 + $0x50] sm:$0xff]  ;;  %v1025_v40 = vld [vmem:[#allocation3 + $0x38] sm:$0xff] }
 0x238   : > { %1522 = vmatpush.msra.mxu2 %v1122_v39  ;;  %1523 = vmatpush.msra.mxu3 %v1122_v39  ;;  %v1070_v8 = vmul.f32 %v1778_v38, %v1006_v62  ;;  %v1780_v12 = vpop.eup %1779  ;;  %v1110_v15 = vadd.f32 %v1094_v5, %v1078_v43  ;;  %v1011_v18 = vld [vmem:[#allocation2 + $0x20] sm:$0xff]  ;;  %1791 = vrcp.f32 %v1036_v16  ;;  %v1095_v34 = vld [vmem:[%s2568_s24 + $0x68] sm:$0xff]  ;;  %v1049_v42 = vadd.f32 1e-20, %v1033_v31  ;;  %v1012_v50 = vld [vmem:[#allocation2 + $0x10] sm:$0xff] }
 0x239   : > { %1141 = vmatpush.msra.mxu0 %v1122_v39  ;;  %1521 = vmatpush.msra.mxu1 %v1122_v39  ;;  %v1782_v17 = vpop.eup %1781  ;;  %v1098_v23 = vadd.f32 %v1082_v10, %v1066_v7  ;;  %v1003_v26 = vld [vmem:[#allocation2] sm:$0xff]  ;;  %v1075_v30 = vmul.f32 %v1780_v12, %v1011_v18  ;;  %1793 = vrcp.f32 %v1040_v20  ;;  %v1045_v39 = vadd.f32 1e-20, %v1029_v29  ;;  %v1083_v33 = vld [vmem:[%s2568_s24 + $0x8] sm:$0xff]  ;;  %v1016_v51 = vld [vmem:[#allocation2 + $0x78] sm:$0xff] }
 0x23a   : > { %1525 = vmatpush.msra.mxu2 %v1121_v41  ;;  %1526 = vmatpush.msra.mxu3 %v1121_v41  ;;  %v1784_v21 = vpop.eup %1783  ;;  %v1102_v24 = vadd.f32 %v1086_v11, %v1070_v8  ;;  %v1079_v22 = vmul.f32 %v1782_v17, %v1015_v19  ;;  %v1021_v28 = vld [vmem:[#allocation3 + $0x40] sm:$0xff]  ;;  %v1041_v52 = vadd.f32 1e-20, %v1025_v40  ;;  %v1004_v57 = vld [vmem:[#allocation2 + $0x58] sm:$0xff]  ;;  %v1008_v58 = vld [vmem:[#allocation2 + $0x8] sm:$0xff] }
 0x23b   : > { %1142 = vmatpush.msra.mxu0 %v1121_v41  ;;  %1524 = vmatpush.msra.mxu1 %v1121_v41  ;;  %v1786_v25 = vpop.eup %1785  ;;  %v1067_v35 = vmul.f32 %v1784_v21, %v1003_v26  ;;  %v1087_v41 = vld [vmem:[%s2568_s24 + $0x28] sm:$0xff]  ;;  %v1107_v45 = vadd.f32 %v1091_v32, %v1075_v30  ;;  %1795 = vrcp.f32 %v1045_v39  ;;  %v1092_v38 = vld [vmem:[%s2568_s24 + $0x50] sm:$0xff]  ;;  %v1013_v49 = vld [vmem:[#allocation2 + $0x38] sm:$0xff] }
 0x23c   : > { %1528 = vmatpush.msra.mxu2 %v1120_v44  ;;  %1529 = vmatpush.msra.mxu3 %v1120_v44  ;;  %v1071_v36 = vmul.f32 %v1786_v25, %v1007_v27  ;;  %v1111_v46 = vadd.f32 %v1095_v34, %v1079_v22  ;;  %1797 = vrcp.f32 %v1049_v42  ;;  %v1096_v61 = vld [vmem:[%s2568_s24 + $0x70] sm:$0xff]  ;;  %v1005_v10 = vld [vmem:[#allocation2 + $0x18] sm:$0xff]  ;;  %v1009_v11 = vld [vmem:[#allocation2 + $0x48] sm:$0xff] }
 0x23d   : > { %1143 = vmatpush.msra.mxu0 %v1120_v44  ;;  %1527 = vmatpush.msra.mxu1 %v1120_v44  ;;  %v1788_v44 = vpop.eup %1787  ;;  %v1099_v37 = vadd.f32 %v1083_v33, %v1067_v35  ;;  %v1088_v1 = vld [vmem:[%s2568_s24 + $0x30] sm:$0xff]  ;;  %v1085_v17 = vld [vmem:[%s2568_s24 + $0x18] sm:$0xff] }
 0x23e   : > { %1531 = vmatpush.msra.mxu2 %v1119_v47  ;;  %1532 = vmatpush.msra.mxu3 %v1119_v47  ;;  %v1790_v48 = vpop.eup %1789  ;;  %v1103_v55 = vadd.f32 %v1087_v41, %v1071_v36  ;;  %v1076_v59 = vmul.f32 %v1788_v44, %v1012_v50  ;;  %v1089_v18 = vld [vmem:[%s2568_s24 + $0x38] sm:$0xff] }
 0x23f   : > { %1144 = vmatpush.msra.mxu0 %v1119_v47  ;;  %1530 = vmatpush.msra.mxu1 %v1119_v47  ;;  %v1037_v47 = vadd.f32 1e-20, %v1021_v28 }
 0x240   : > { %1534 = vmatpush.msra.mxu2 %v1118_v53  ;;  %1535 = vmatpush.msra.mxu3 %v1118_v53  ;;  %v1108_v2 = vadd.f32 %v1092_v38, %v1076_v59 }
 0x241   : > { %1145 = vmatpush.msra.mxu0 %v1118_v53  ;;  %1533 = vmatpush.msra.mxu1 %v1118_v53  ;;  %v1792_v53 = vpop.eup %1791  ;;  %1799 = vrcp.f32 %v1037_v47 }
 0x242   : > { %1537 = vmatpush.msra.mxu2 %v1117_v60  ;;  %1538 = vmatpush.msra.mxu3 %v1117_v60  ;;  %v1794_v56 = vpop.eup %1793  ;;  %1801 = vrcp.f32 %v1041_v52  ;;  %v1068_v62 = vmul.f32 %v1792_v53, %v1004_v57 }
 0x243   : > { %1146 = vmatpush.msra.mxu0 %v1117_v60  ;;  %1536 = vmatpush.msra.mxu1 %v1117_v60  ;;  %v1080_v60 = vmul.f32 %v1790_v48, %v1016_v51  ;;  %v1072_v63 = vmul.f32 %v1794_v56, %v1008_v58  ;;  %v1796_v43 = vpop.eup %1795 }
 0x244   : > { %1540 = vmatpush.msra.mxu2 %v1116_v0  ;;  %1541 = vmatpush.msra.mxu3 %v1116_v0  ;;  %v1798_v5 = vpop.eup %1797  ;;  %v1077_v4 = vmul.f32 %v1796_v43, %v1013_v49 }
 0x245   : > { %1147 = vmatpush.msra.mxu0 %v1116_v0  ;;  %1539 = vmatpush.msra.mxu1 %v1116_v0  ;;  %v1084_v0 = vld [vmem:[%s2568_s24 + $0x10] sm:$0xff]  ;;  %v1112_v3 = vadd.f32 %v1096_v61, %v1080_v60  ;;  %v1104_v54 = vadd.f32 %v1088_v1, %v1072_v63 }
 0x246   : > { %1543 = vmatpush.msra.mxu2 %v1115_v6  ;;  %1544 = vmatpush.msra.mxu3 %v1115_v6  ;;  %v1100_v8 = vadd.f32 %v1084_v0, %v1068_v62 }
 0x247   : > { %1148 = vmatpush.msra.mxu0 %v1115_v6  ;;  %1542 = vmatpush.msra.mxu1 %v1115_v6  ;;  %v1017_v6 = vld [vmem:[#allocation2 + $0x28] sm:$0xff]  ;;  %v1800_v7 = vpop.eup %1799 }
 0x248   : > { %1546 = vmatpush.msra.mxu2 %v1114_v13  ;;  %1547 = vmatpush.msra.mxu3 %v1114_v13  ;;  %v1802_v9 = vpop.eup %1801  ;;  %v1081_v12 = vmul.f32 %v1798_v5, %v1017_v6 }
 0x249   : > { %1174 = vmatmul.f32.vlgmr.msra.gmra.mxu2 %v1106_v14  ;;  %1186 = vmatmul.f32.vlgmr.msra.gmra.mxu3 %v1110_v15  ;;  %v1097_v14 = vld [vmem:[%s2568_s24 + $0x78] sm:$0xff]  ;;  %v1069_v15 = vmul.f32 %v1800_v7, %v1005_v10  ;;  %v1073_v16 = vmul.f32 %v1802_v9, %v1009_v11 }
 0x24a   : > { %1149 = vmatpush.msra.mxu0 %v1114_v13  ;;  %1545 = vmatpush.msra.mxu1 %v1114_v13  ;;  %v1093_v13 = vld [vmem:[%s2568_s24 + $0x58] sm:$0xff]  ;;  %v1113_v20 = vadd.f32 %v1097_v14, %v1081_v12 }
 0x24b   : > { %1150 = vmatmul.f32.vlgmr.msra.gmra.mxu0 %v1098_v23  ;;  %1162 = vmatmul.f32.vlgmr.msra.gmra.mxu1 %v1102_v24  ;;  %v1109_v19 = vadd.f32 %v1093_v13, %v1077_v4  ;;  %v1101_v21 = vadd.f32 %v1085_v17, %v1069_v15  ;;  %v1105_v23 = vadd.f32 %v1089_v18, %v1073_v16  ;;  %v1770_v24 = vld [vmem:[%s3012_s8] ss:$0 sm:$0xff] }
 0x251   : > { %1177 = vmatmul.f32.gmra.mxu2 %v1107_v45  ;;  %1189 = vmatmul.f32.gmra.mxu3 %v1111_v46 }
 0x253   : > { %1153 = vmatmul.f32.gmra.mxu0 %v1099_v37  ;;  %1165 = vmatmul.f32.gmra.mxu1 %v1103_v55 }
 0x259   : > { %1180 = vmatmul.f32.gmra.mxu2 %v1108_v2  ;;  %1192 = vmatmul.f32.gmra.mxu3 %v1112_v3 }
 0x25b   : > { %1156 = vmatmul.f32.gmra.mxu0 %v1100_v8  ;;  %1168 = vmatmul.f32.gmra.mxu1 %v1104_v54 }
 0x261   : > { %1183 = vmatmul.f32.gmra.mxu2 %v1109_v19  ;;  %1195 = vmatmul.f32.gmra.mxu3 %v1113_v20 }
 0x263   : > { %1159 = vmatmul.f32.gmra.mxu0 %v1101_v21  ;;  %1171 = vmatmul.f32.gmra.mxu1 %v1105_v23 }
 0x2c8   : > { %v1151_v25 = vpop.f32.mrf.mxu0  ;;  %v1163_v26 = vpop.f32.mrf.mxu1 }
 0x2c9   : > { %v1152_v27 = vadd.f32 %v1770_v24, %v1151_v25  ;;  %v1164_v29 = vadd.f32 %v1770_v24, %v1163_v26 }
 0x2cb   : > { %1199 = vst [vmem:[%s2593_s20] sm:$0xff] %v1152_v27 }
 0x2cc   : > { %1203 = vst [vmem:[%s2593_s20 + $0x20] sm:$0xff] %v1164_v29  ;;  %v1175_v30 = vpop.f32.mrf.mxu2  ;;  %v1187_v22 = vpop.f32.mrf.mxu3 }
 0x2cd   : > { %v1176_v31 = vadd.f32 %v1770_v24, %v1175_v30  ;;  %v1188_v32 = vadd.f32 %v1770_v24, %v1187_v22 }
 0x2cf   : > { %1207 = vst [vmem:[%s2593_s20 + $0x40] sm:$0xff] %v1176_v31 }
 0x2d0   : > { %1211 = vst [vmem:[%s2593_s20 + $0x60] sm:$0xff] %v1188_v32  ;;  %v1154_v34 = vpop.f32.mrf.mxu0  ;;  %v1166_v28 = vpop.f32.mrf.mxu1 }
 0x2d1   : > { %v1155_v35 = vadd.f32 %v1770_v24, %v1154_v34  ;;  %v1167_v36 = vadd.f32 %v1770_v24, %v1166_v28 }
 0x2d3   : > { %1200 = vst [vmem:[%s2593_s20 + $0x8] sm:$0xff] %v1155_v35 }
 0x2d4   : > { %1204 = vst [vmem:[%s2593_s20 + $0x28] sm:$0xff] %v1167_v36  ;;  %v1178_v39 = vpop.f32.mrf.mxu2  ;;  %v1190_v40 = vpop.f32.mrf.mxu3 }
 0x2d5   : > { %v1179_v33 = vadd.f32 %v1770_v24, %v1178_v39  ;;  %v1191_v41 = vadd.f32 %v1770_v24, %v1190_v40 }
 0x2d7   : > { %1208 = vst [vmem:[%s2593_s20 + $0x48] sm:$0xff] %v1179_v33 }
 0x2d8   : > { %1212 = vst [vmem:[%s2593_s20 + $0x68] sm:$0xff] %v1191_v41  ;;  %v1157_v42 = vpop.f32.mrf.mxu0  ;;  %v1169_v44 = vpop.f32.mrf.mxu1 }
 0x2d9   : > { %v1158_v45 = vadd.f32 %v1770_v24, %v1157_v42  ;;  %v1170_v46 = vadd.f32 %v1770_v24, %v1169_v44 }
 0x2db   : > { %1201 = vst [vmem:[%s2593_s20 + $0x10] sm:$0xff] %v1158_v45 }
 0x2dc   : > { %1205 = vst [vmem:[%s2593_s20 + $0x30] sm:$0xff] %v1170_v46  ;;  %v1181_v47 = vpop.f32.mrf.mxu2  ;;  %v1193_v48 = vpop.f32.mrf.mxu3 }
 0x2dd   : > { %v1182_v50 = vadd.f32 %v1770_v24, %v1181_v47  ;;  %v1194_v51 = vadd.f32 %v1770_v24, %v1193_v48 }
 0x2df   : > { %1209 = vst [vmem:[%s2593_s20 + $0x50] sm:$0xff] %v1182_v50 }
 0x2e0   : > { %1213 = vst [vmem:[%s2593_s20 + $0x70] sm:$0xff] %v1194_v51  ;;  %v1160_v52 = vpop.f32.mrf.mxu0  ;;  %v1172_v53 = vpop.f32.mrf.mxu1 }
 0x2e1   : > { %v1161_v37 = vadd.f32 %v1770_v24, %v1160_v52  ;;  %v1173_v55 = vadd.f32 %v1770_v24, %v1172_v53 }
 0x2e3   : > { %1202 = vst [vmem:[%s2593_s20 + $0x18] sm:$0xff] %v1161_v37 }
 0x2e4   : > { %1206 = vst [vmem:[%s2593_s20 + $0x38] sm:$0xff] %v1173_v55  ;;  %v1184_v56 = vpop.f32.mrf.mxu2  ;;  %v1196_v57 = vpop.f32.mrf.mxu3 }
 0x2e5   : > { %v1185_v58 = vadd.f32 %v1770_v24, %v1184_v56  ;;  %v1197_v59 = vadd.f32 %v1770_v24, %v1196_v57 }
 0x2e7   : > { %1210 = vst [vmem:[%s2593_s20 + $0x58] sm:$0xff] %v1185_v58 }
 0x2e8   : > { %1214 = vst [vmem:[%s2593_s20 + $0x78] sm:$0xff] %v1197_v59 }
 0x2e9 PF: > { %s3013_s24 = sld [smem:[#allocation42_spill]]  ;;  %s1228_s23 = sshll.u32 %s2593_s20, 4  ;;  %s1229_s23 = int_to_ptr.vmem [resolvable:$true] %s1228_s23 }
 0x2ea   : > { %s3014_s0 = sld [smem:[#allocation58_spill]]  ;;  %s1216_s12 = scalar_lea.sflag [#allocation12], %s2564_s14 }
 0x2ef   : > { %s1467_s11 = sshll.u32 %s3013_s24, 7 }
 0x2f0   : > { %s3015_s5 = smov %s3014_s0  ;;  %s1227_s19 = scalar_lea.hbm %s3014_s0, %s1467_s11 }
 0x2f1   : > { %s1230_s21 = sshll.u32 %s1227_s19, 4  ;;  %s2003_s7 = scalar_lea.hbm %s3015_s5, 384  ;;  %s1231_s21 = int_to_ptr.hbm [resolvable:$true] %s1230_s21 }
 0x2f2   : > { %s1997_s16 = sshra.s32 %s1231_s21, 4  ;;  %s1998_s16 = int_to_ptr.hbm [resolvable:$true] %s1997_s16 }
 0x2f3   : > { %s1999_s30 = scalar_lea.hbm %s1998_s16, 128  ;;  %p2004_p3 = scmp.lt.s32.totalorder %s1998_s16, %s3015_s5 }
 0x2f4   : > { %p2000_p6 = scmp.ne.s32.totalorder %s1998_s16, %s1999_s30  ;;  %p2005_p8 = scmp.lt.s32.totalorder %s2003_s7, %s1999_s30 }
 0x2f6   : > { %p2001_p5 = pnand %p2000_p6, %p2470_p13  ;;  %p2006_p0 = por %p2005_p8, %p2004_p3 }
 0x2f8   : > { %p2002_p12 = pneg %p2001_p5 }
 0x2fa   : > { %p2007_p9 = pnand %p2006_p0, %p2002_p12 }
 0x2fc   : > { %2010 = shalt.err (!%p2007_p9)
}
 0x2fd   : > { %s2172_s14 = smov 128   ;;  %s2173_s20 = smov 8  }
 0x2fe   : > { %1566 = dma.vmem_to_hbm [thread:$0]  (%p2470_p13), %s1229_s23, 2048, %s1231_s21, %s1216_s12, %s2172_s14, %s2172_s14, %s2173_s20  }
 0x2ff PF: > { %p1597_p10 = scmp.ge.s32.totalorder %s2153_s15, 2  ;;  %s1245_s26 = sand.u32 1, %s2125_s28  }
 0x300   : > { %p3016_p1 = scmp.ne.s32.totalorder %s2985_s10, 0  ;;  %s1246_s6 = scalar_lea.sflag [#allocation12], %s1245_s26 }
 0x302   : > { %p1591_p7 = pnand %p1597_p10, %p3016_p1 }
 0x304   : > { %p1592_p4 = pneg %p1591_p7 }
 0x306   : > { %2096 = dma.done.wait (%p1592_p4), %s1246_s6, 2048  }
 0x307   : > { %2098 = vsyncadd (%p1592_p4), %s1246_s6, 4294965248  ;;  %s48_s15 = sadd.s32 1, %s2153_s15   ;;  %s3018_s2 = sld [smem:[#allocation50_spill]] }
 0x308   : > { %p2868_p2 = scmp.ge.s32.totalorder %s48_s15, 20   ;;  %s3019_s24 = sld [smem:[#allocation38_spill]] }
 0x309   : > { %s3020_s26 = sld [smem:[#allocation39_spill]]  ;;  %s3027_s0 = smov %s2105_s1 }
 0x30a   : > { %s3021_s27 = sld [smem:[#allocation47_spill]]  ;;  %s3028_s1 = smov %s2109_s25 }
 0x30b   : > { %s3022_s11 = sld [smem:[#allocation40_spill]]  ;;  %s3031_s28 = smov %s2129_s29 }
 0x30c   : > { %s3023_s30 = sld [smem:[#allocation49_spill]] }
 0x30d   : > { %s3024_s12 = sld [smem:[#allocation43_spill]]  ;;  %s3029_s25 = smov %s3018_s2 }
 0x30e   : > { %s3025_s10 = sld [smem:[#allocation44_spill]]  ;;  %s3030_s2 = smov %s3019_s24 }
 0x30f   : > { %s3026_s14 = sld [smem:[#allocation45_spill]] }
 0x310   :  { %47 = sbr.rel (!%p2868_p2) target bundleno = 28 (0x1c), region = 171 }
 0x311   : > { %s3032_s29 = smov %s3022_s11  ;;  %s3033_s11 = smov %s2145_s13 }
 0x314   : > { %s3034_s13 = smov %s3025_s10 }
 0x315   :  { %1252 = vsyncpa [#allocation11], 1 }
 0x316   :  { %1254 = vsyncpa [#allocation11 + $0x1], 1 }
 0x317   :  { %1255 = vsyncpa [#allocation14], 1 }
 0x318   :  { %1257 = vsyncpa [#allocation14 + $0x1], 1 }
 0x319   :  { %1258 = vsyncpa [#allocation17], 1 }
 0x31a   :  { %1259 = vsyncpa [#allocation12], 1 }
 0x31b   :  { %1261 = vsyncpa [#allocation12 + $0x1], 1 }
 0x31c   :  { %1262 = vsyncmov [#allocation5] }
 0x31f   :  { %s1263_s18 = vpop.sfrf %1262 }
 0x320   :  { %p1464_p13 = scmp.ne.s32.totalorder %s1263_s18, 0 }
 0x322   :  { %1267 = shalt.err (%p1464_p13)  }

</bundles_post_ra>
